<compile_context>
chip_gen: v6e
topology: v6e:2x2x1
jax: 0.10.0
libtpu: 0.0.40
codegen_flags: <defaults>
</compile_context>

<pallas_src>
import functools

import jax
import jax.numpy as jnp
from jax.experimental import pallas as pl
from jax.experimental.pallas import tpu as pltpu


def _vmem_budget():
    """(block-selection budget, vmem_limit_bytes), derived from the chip.

    v5e/v6e report 128 MiB, v7x 64 MiB; the fallback assumes the smaller v7x
    capacity so tiles never overflow on any generation."""
    try:
        cap = int(pltpu.get_tpu_info().vmem_capacity_bytes)
    except Exception:  # no query available -> be v7x-safe
        cap = 64 * 1024 * 1024
    return int(cap * 0.60), int(cap * 0.75)


def _pick_c_tile(c, per_c_bytes, budget_bytes, batch):
    """Largest channel tile that (a) divides c, (b) is 8-aligned or == c,
    (c) fits the per-grid-step VMEM budget, and (d) leaves >= 2 parallel grid
    steps when possible (v7x megacore)."""
    cap = max(1, budget_bytes // max(per_c_bytes, 1))
    divs = [d for d in range(1, c + 1) if c % d == 0]
    cands = [d for d in divs if d <= cap and (d == c or d % 8 == 0)]
    if not cands:
        cands = [d for d in divs if d <= cap]
    c_tile = max(cands)
    if batch * (c // c_tile) < 2:
        smaller = [d for d in cands if batch * (c // d) >= 2]
        if smaller:
            c_tile = max(smaller)
    return c_tile


def _normalize(x_raw, invn=None):
    """ReLU + channel-L2 normalization in f32.  x_raw: (c, hw)."""
    xr = jnp.maximum(x_raw.astype(jnp.float32), 0.0)
    if invn is None:
        ssq = jnp.sum(xr * xr, axis=0, keepdims=True)      # f32 accumulation
        # 1 / max(||x||, 1e-12) == rsqrt(max(||x||^2, 1e-24))  (EUP, not VPU)
        invn = jax.lax.rsqrt(jnp.maximum(ssq, 1e-24))
    return xr * invn


def _scr_tail(xn, o_ref, buf_ref, *, kh, kw, pad, h, w, xn_off, hold_center):
    """25-tap self-correlation of the normalized map `xn` (c_tile, h*w)."""
    hw = h * w
    ct, buf_len = buf_ref.shape
    base = xn_off - pad * (w + 1)      # start of the useful buffer span

    # Flat zero-padded copy of the normalized map: tap (u, v) is the static
    # lane slice buf[:, base + u*w + v : ... + hw].  Vertically out-of-range
    # taps land in the two short zero runs; horizontally out-of-range taps
    # alias the neighbouring row and are masked below.  xn sits at a
    # 128-lane-aligned offset so its (large) store is unmasked, and only the
    # two short padding runs get zeroed (not the whole buffer).
    buf_ref[:, xn_off:xn_off + hw] = xn
    if xn_off > base:
        buf_ref[:, base:xn_off] = jnp.zeros((ct, xn_off - base), jnp.float32)
    if buf_len > xn_off + hw:
        buf_ref[:, xn_off + hw:] = jnp.zeros(
            (ct, buf_len - (xn_off + hw)), jnp.float32)

    # Hoisted column-validity masks: only kw-1 distinct masks exist.
    col = jax.lax.broadcasted_iota(jnp.int32, (1, hw), 1) % w
    col_mask = []
    for v in range(kw):
        if v < pad:
            col_mask.append(col >= (pad - v))
        elif v > pad:
            col_mask.append(col < (w + pad - v))
        else:
            col_mask.append(None)                 # center column: all valid

    for u in range(kh):
        row = base + u * w
        for v in range(kw):
            shifted = buf_ref[:, row + v:row + v + hw]        # static slice
            # Center map: held in vregs when small, else re-read (aligned).
            ctr = xn if hold_center else buf_ref[:, xn_off:xn_off + hw]
            prod = ctr * shifted
            if col_mask[v] is not None:
                prod = jnp.where(col_mask[v], prod, 0.0)
            o_ref[0, u * kw + v] = prod.astype(o_ref.dtype)


def _scr_fused_kernel(x_ref, o_ref, buf_ref, *, kh, kw, pad, h, w, xn_off,
                      hold_center):
    """Fused ReLU + normalize + self-correlation (channel dim not tiled).

    x_ref: (1, c, hw)   o_ref: (1, kh*kw, c, hw)   buf_ref: (c, buf_len) f32
    """
    xn = _normalize(x_ref[0])
    _scr_tail(xn, o_ref, buf_ref, kh=kh, kw=kw, pad=pad, h=h, w=w,
              xn_off=xn_off, hold_center=hold_center)


def _inv_norm_kernel(x_ref, o_ref):
    """Per-pixel inverse channel L2 norm (two-pass / channel-tiled path)."""
    xr = jnp.maximum(x_ref[0].astype(jnp.float32), 0.0)
    ssq = jnp.sum(xr * xr, axis=0, keepdims=True)
    o_ref[0] = jax.lax.rsqrt(jnp.maximum(ssq, 1e-24))


def _scr_tiled_kernel(x_ref, invn_ref, o_ref, buf_ref, *, kh, kw, pad, h, w,
                      xn_off, hold_center):
    """Self-correlation for one (batch, channel-tile) step (two-pass path)."""
    xn = _normalize(x_ref[0], invn_ref[0])
    _scr_tail(xn, o_ref, buf_ref, kh=kh, kw=kw, pad=pad, h=h, w=w,
              xn_off=xn_off, hold_center=hold_center)


def self_correlation_computation(x, kernel_size=(5, 5), padding=2, *,
                                 out_dtype=None, tap_major=False, c_tile=None):
    """Pallas equivalent of SelfCorrelationComputation.forward (NCHW input).

    tap_major=True returns the kernel-native (b, kh*kw, c, h, w) layout and
    skips the final transpose (use when the consumer can be fused).
    out_dtype lets the 25x output be emitted in e.g. bf16 to halve HBM writes.
    """
    b, c, h, w = x.shape
    kh, kw = kernel_size
    # The module's .view(b, c, kh, kw, h, w) after nn.Unfold requires this.
    assert kh == 2 * padding + 1 and kw == 2 * padding + 1, (kh, kw, padding)

    hw = h * w
    kk = kh * kw
    out_dtype = jnp.dtype(x.dtype if out_dtype is None else out_dtype)
    xf = x.reshape(b, c, hw)                          # free (no data movement)
    # NOTE: if hw < 128 the lane dim under-fills; SCR is normally applied to
    # maps with hw >= 128 so the hw-minor layout is kept.

    # Flat padded buffer geometry; xn placed at a 128-lane-aligned offset.
    min_off = padding * (w + 1)
    xn_off = (-(-min_off // 128) * 128) if min_off else 0
    buf_len = xn_off + hw + min_off

    budget, vmem_limit = _vmem_budget()
    out_isz = out_dtype.itemsize
    in_isz = jnp.dtype(x.dtype).itemsize
    # Per-channel-row VMEM footprint: double-buffered out + in blocks + scratch.
    per_c = 2 * (kk * hw * out_isz + hw * in_isz) + buf_len * 4
    if c_tile is None:
        c_tile = _pick_c_tile(c, per_c, budget, b)
    assert c % c_tile == 0, (c, c_tile)

    hold_center = c_tile * hw * 4 <= 64 * 1024        # ~16 vregs max
    kern_kw = dict(kh=kh, kw=kw, pad=padding, h=h, w=w, xn_off=xn_off,
                   hold_center=hold_center)

    if c_tile == c:
        # Fused single pass: no separate norm kernel, no invn HBM round trip.
        out = pl.pallas_call(
            functools.partial(_scr_fused_kernel, **kern_kw),
            out_shape=jax.ShapeDtypeStruct((b, kk, c, hw), out_dtype),
            grid=(b,),
            in_specs=[pl.BlockSpec((1, c, hw), lambda bi: (bi, 0, 0))],
            out_specs=pl.BlockSpec((1, kk, c, hw), lambda bi: (bi, 0, 0, 0)),
            scratch_shapes=[pltpu.VMEM((c, buf_len), jnp.float32)],
            compiler_params=pltpu.CompilerParams(
                dimension_semantics=("parallel",),
                vmem_limit_bytes=vmem_limit),
        )(xf)
    else:
        # Pass 1: per-pixel inverse channel norm (~1/kk of the total traffic).
        invn = pl.pallas_call(
            _inv_norm_kernel,
            out_shape=jax.ShapeDtypeStruct((b, 1, hw), jnp.float32),
            grid=(b,),
            in_specs=[pl.BlockSpec((1, c, hw), lambda bi: (bi, 0, 0))],
            out_specs=pl.BlockSpec((1, 1, hw), lambda bi: (bi, 0, 0)),
            compiler_params=pltpu.CompilerParams(
                dimension_semantics=("parallel",),
                vmem_limit_bytes=vmem_limit),
        )(xf)
        # Pass 2: 25-tap self-correlation over a (batch, channel-tile) grid.
        out = pl.pallas_call(
            functools.partial(_scr_tiled_kernel, **kern_kw),
            out_shape=jax.ShapeDtypeStruct((b, kk, c, hw), out_dtype),
            grid=(b, c // c_tile),
            in_specs=[
                pl.BlockSpec((1, c_tile, hw), lambda bi, ci: (bi, ci, 0)),
                pl.BlockSpec((1, 1, hw), lambda bi, ci: (bi, 0, 0)),
            ],
            out_specs=pl.BlockSpec((1, kk, c_tile, hw),
                                   lambda bi, ci: (bi, 0, ci, 0)),
            scratch_shapes=[pltpu.VMEM((c_tile, buf_len), jnp.float32)],
            compiler_params=pltpu.CompilerParams(
                dimension_semantics=("parallel", "parallel"),
                vmem_limit_bytes=vmem_limit),
        )(xf, invn)

    if tap_major:
        # Fusion-friendly layout: (b, kh*kw, c, h, w), no extra HBM traffic.
        return out.reshape(b, kk, c, h, w)

    # PyTorch's tap-minor (b, c, h, w, kh, kw) order.  Both reshapes are free;
    # only the transpose moves data.  We deliberately do NOT write kk=25 as
    # the kernel's minor output dim (masked vst, ~5x slower stores).
    # TODO(synk): fuse the downstream consumer (reading the tap-major layout
    # directly) to remove this transpose's HBM traffic.
    out = jnp.transpose(out, (0, 2, 3, 1))
    return out.reshape(b, c, h, w, kh, kw)


def _reference(x, kernel_size=(5, 5), padding=2):
    """Pure-JAX reference replicating the PyTorch forward."""
    b, c, h, w = x.shape
    kh, kw = kernel_size
    xr = jnp.maximum(x, 0.0)
    norm = jnp.sqrt(jnp.sum(xr.astype(jnp.float32) ** 2, axis=1, keepdims=True))
    xn = (xr / jnp.maximum(norm, 1e-12)).astype(x.dtype)
    xp = jnp.pad(xn, ((0, 0), (0, 0), (padding, padding), (padding, padding)))
    out = jnp.zeros((b, c, h, w, kh, kw), x.dtype)
    for u in range(kh):
        for v in range(kw):
            out = out.at[..., u, v].set(xn * xp[:, :, u:u + h, v:v + w])
    return out


if __name__ == "__main__":
    key0, key1 = jax.random.split(jax.random.PRNGKey(0))

    # Fused single-pass path (channels fit in one tile).
    b, c, h, w = 2, 4, 16, 16
    x = jax.random.normal(key0, (b, c, h, w), dtype=jnp.float32)
    y = jax.block_until_ready(self_correlation_computation(x))
    y_ref = _reference(x)
    assert y.shape == (b, c, h, w, 5, 5), y.shape
    assert jnp.allclose(y, y_ref, atol=1e-5, rtol=1e-5), \
        float(jnp.max(jnp.abs(y - y_ref)))

    # Channel-tiled two-pass path (forced small tile to exercise it).
    b2, c2 = 2, 16
    x2 = jax.random.normal(key1, (b2, c2, h, w), dtype=jnp.float32)
    y2 = jax.block_until_ready(self_correlation_computation(x2, c_tile=8))
    y2_ref = _reference(x2)
    assert y2.shape == (b2, c2, h, w, 5, 5), y2.shape
    assert jnp.allclose(y2, y2_ref, atol=1e-5, rtol=1e-5), \
        float(jnp.max(jnp.abs(y2 - y2_ref)))

    print("KERNEL_OK")
</pallas_src>

<mosaic_0001>
module attributes {stable_mosaic.version = 11 : i64} {
  func.func @_scr_fused_kernel(%arg0: i32, %arg1: memref<1x4x256xf32, #tpu.memory_space<vmem>>, %arg2: memref<1x25x4x256xf32, #tpu.memory_space<vmem>>, %arg3: memref<4x418xf32, #tpu.memory_space<vmem>>) attributes {dimension_semantics = [#tpu.dimension_semantics<parallel>], iteration_bounds = array<i64: 2>, scalar_prefetch = 0 : i64, scratch_operands = 1 : i64, tpu.core_type = #tpu.core_type<tc>, window_params = [{transform_indices = @transform_0, window_bounds = array<i64: 1, 4, 256>}, {transform_indices = @transform_1, window_bounds = array<i64: 1, 25, 4, 256>}]} {
    %c0 = arith.constant 0 : index
    %c0_0 = arith.constant 0 : index
    %c0_1 = arith.constant 0 : index
    %0 = vector.load %arg1[%c0, %c0_0, %c0_1] : memref<1x4x256xf32, #tpu.memory_space<vmem>>, vector<1x4x256xf32>
    %1 = vector.shape_cast %0 : vector<1x4x256xf32> to vector<4x256xf32>
    %cst = arith.constant 0.000000e+00 : f32
    %2 = vector.broadcast %cst : f32 to vector<4x256xf32>
    %3 = arith.maximumf %1, %2 : vector<4x256xf32>
    %4 = arith.mulf %3, %3 : vector<4x256xf32>
    %cst_2 = arith.constant dense<0.000000e+00> : vector<256xf32>
    %5 = vector.multi_reduction <add>, %4, %cst_2 [0] : vector<4x256xf32> to vector<256xf32>
    %6 = vector.shape_cast %5 : vector<256xf32> to vector<1x256xf32>
    %cst_3 = arith.constant 1.000000e-24 : f32
    %7 = vector.broadcast %cst_3 : f32 to vector<1x256xf32>
    %8 = arith.maximumf %6, %7 : vector<1x256xf32>
    %9 = math.rsqrt %8 : vector<1x256xf32>
    %10 = vector.broadcast %9 : vector<1x256xf32> to vector<4x256xf32>
    %11 = arith.mulf %3, %10 : vector<4x256xf32>
    %c0_4 = arith.constant 0 : index
    %c128 = arith.constant 128 : index
    %12 = vector.load %arg3[%c0_4, %c128] : memref<4x418xf32, #tpu.memory_space<vmem>>, vector<4x256xf32>
    tpu.vector_store %arg3[%c0_4, %c128], %11 {strides = array<i32>} : memref<4x418xf32, #tpu.memory_space<vmem>>, vector<4x256xf32>,
    %cst_5 = arith.constant 0.000000e+00 : f32
    %13 = vector.broadcast %cst_5 : f32 to vector<4x34xf32>
    %c0_6 = arith.constant 0 : index
    %c94 = arith.constant 94 : index
    %14 = vector.load %arg3[%c0_6, %c94] : memref<4x418xf32, #tpu.memory_space<vmem>>, vector<4x34xf32>
    tpu.vector_store %arg3[%c0_6, %c94], %13 {strides = array<i32>} : memref<4x418xf32, #tpu.memory_space<vmem>>, vector<4x34xf32>,
    %cst_7 = arith.constant 0.000000e+00 : f32
    %15 = vector.broadcast %cst_7 : f32 to vector<4x34xf32>
    %c0_8 = arith.constant 0 : index
    %c384 = arith.constant 384 : index
    %16 = vector.load %arg3[%c0_8, %c384] : memref<4x418xf32, #tpu.memory_space<vmem>>, vector<4x34xf32>
    tpu.vector_store %arg3[%c0_8, %c384], %15 {strides = array<i32>} : memref<4x418xf32, #tpu.memory_space<vmem>>, vector<4x34xf32>,
    %17 = tpu.iota {dimensions = array<i32: 1>} : vector<1x256xi32>
    %c16_i32 = arith.constant 16 : i32
    %c0_i32 = arith.constant 0 : i32
    %18 = arith.cmpi eq, %c16_i32, %c0_i32 : i32
    %c1_i32 = arith.constant 1 : i32
    %19 = arith.select %18, %c1_i32, %c16_i32 : i32
    %20 = vector.broadcast %19 : i32 to vector<1x256xi32>
    %21 = arith.remsi %17, %20 : vector<1x256xi32>
    %c0_i32_9 = arith.constant 0 : i32
    %22 = vector.broadcast %c0_i32_9 : i32 to vector<1x256xi32>
    %23 = arith.cmpi ne, %21, %22 : vector<1x256xi32>
    %c0_i32_10 = arith.constant 0 : i32
    %24 = vector.broadcast %c0_i32_10 : i32 to vector<1x256xi32>
    %25 = arith.cmpi slt, %21, %24 : vector<1x256xi32>
    %c0_i32_11 = arith.constant 0 : i32
    %26 = arith.cmpi slt, %19, %c0_i32_11 : i32
    %27 = vector.broadcast %26 : i1 to vector<1x256xi1>
    %28 = vector.broadcast %27 : vector<1x256xi1> to vector<1x256xi1>
    %29 = arith.xori %25, %28 : vector<1x256xi1>
    %30 = arith.andi %29, %23 : vector<1x256xi1>
    %31 = vector.broadcast %19 : i32 to vector<1x256xi32>
    %32 = arith.addi %21, %31 : vector<1x256xi32>
    %33 = arith.select %30, %32, %21 : vector<1x256xi1>, vector<1x256xi32>
    %c2_i32 = arith.constant 2 : i32
    %34 = vector.broadcast %c2_i32 : i32 to vector<1x256xi32>
    %35 = arith.cmpi sge, %33, %34 : vector<1x256xi32>
    %c1_i32_12 = arith.constant 1 : i32
    %36 = vector.broadcast %c1_i32_12 : i32 to vector<1x256xi32>
    %37 = arith.cmpi sge, %33, %36 : vector<1x256xi32>
    %c15_i32 = arith.constant 15 : i32
    %38 = vector.broadcast %c15_i32 : i32 to vector<1x256xi32>
    %39 = arith.cmpi slt, %33, %38 : vector<1x256xi32>
    %c14_i32 = arith.constant 14 : i32
    %40 = vector.broadcast %c14_i32 : i32 to vector<1x256xi32>
    %41 = arith.cmpi slt, %33, %40 : vector<1x256xi32>
    %c0_13 = arith.constant 0 : index
    %c94_14 = arith.constant 94 : index
    %42 = vector.load %arg3[%c0_13, %c94_14] : memref<4x418xf32, #tpu.memory_space<vmem>>, vector<4x256xf32>
    %43 = arith.mulf %11, %42 : vector<4x256xf32>
    %cst_15 = arith.constant 0.000000e+00 : f32
    %44 = vector.shape_cast %35 : vector<1x256xi1> to vector<1x256xi1>
    %45 = vector.broadcast %44 : vector<1x256xi1> to vector<4x256xi1>
    %46 = vector.broadcast %cst_15 : f32 to vector<4x256xf32>
    %47 = arith.select %45, %43, %46 : vector<4x256xi1>, vector<4x256xf32>
    %c0_16 = arith.constant 0 : index
    %c0_17 = arith.constant 0 : index
    %c0_18 = arith.constant 0 : index
    %c0_19 = arith.constant 0 : index
    %48 = vector.load %arg2[%c0_16, %c0_17, %c0_18, %c0_19] : memref<1x25x4x256xf32, #tpu.memory_space<vmem>>, vector<1x1x4x256xf32>
    %49 = vector.shape_cast %48 : vector<1x1x4x256xf32> to vector<4x256xf32>
    %50 = vector.shape_cast %47 : vector<4x256xf32> to vector<1x1x4x256xf32>
    tpu.vector_store %arg2[%c0_16, %c0_17, %c0_18, %c0_19], %50 {strides = array<i32>} : memref<1x25x4x256xf32, #tpu.memory_space<vmem>>, vector<1x1x4x256xf32>,
    %c0_20 = arith.constant 0 : index
    %c95 = arith.constant 95 : index
    %51 = vector.load %arg3[%c0_20, %c95] : memref<4x418xf32, #tpu.memory_space<vmem>>, vector<4x256xf32>
    %52 = arith.mulf %11, %51 : vector<4x256xf32>
    %cst_21 = arith.constant 0.000000e+00 : f32
    %53 = vector.shape_cast %37 : vector<1x256xi1> to vector<1x256xi1>
    %54 = vector.broadcast %53 : vector<1x256xi1> to vector<4x256xi1>
    %55 = vector.broadcast %cst_21 : f32 to vector<4x256xf32>
    %56 = arith.select %54, %52, %55 : vector<4x256xi1>, vector<4x256xf32>
    %c0_22 = arith.constant 0 : index
    %c1 = arith.constant 1 : index
    %c0_23 = arith.constant 0 : index
    %c0_24 = arith.constant 0 : index
    %57 = vector.load %arg2[%c0_22, %c1, %c0_23, %c0_24] : memref<1x25x4x256xf32, #tpu.memory_space<vmem>>, vector<1x1x4x256xf32>
    %58 = vector.shape_cast %57 : vector<1x1x4x256xf32> to vector<4x256xf32>
    %59 = vector.shape_cast %56 : vector<4x256xf32> to vector<1x1x4x256xf32>
    tpu.vector_store %arg2[%c0_22, %c1, %c0_23, %c0_24], %59 {strides = array<i32>} : memref<1x25x4x256xf32, #tpu.memory_space<vmem>>, vector<1x1x4x256xf32>,
    %c0_25 = arith.constant 0 : index
    %c96 = arith.constant 96 : index
    %60 = vector.load %arg3[%c0_25, %c96] : memref<4x418xf32, #tpu.memory_space<vmem>>, vector<4x256xf32>
    %61 = arith.mulf %11, %60 : vector<4x256xf32>
    %c0_26 = arith.constant 0 : index
    %c2 = arith.constant 2 : index
    %c0_27 = arith.constant 0 : index
    %c0_28 = arith.constant 0 : index
    %62 = vector.load %arg2[%c0_26, %c2, %c0_27, %c0_28] : memref<1x25x4x256xf32, #tpu.memory_space<vmem>>, vector<1x1x4x256xf32>
    %63 = vector.shape_cast %62 : vector<1x1x4x256xf32> to vector<4x256xf32>
    %64 = vector.shape_cast %61 : vector<4x256xf32> to vector<1x1x4x256xf32>
    tpu.vector_store %arg2[%c0_26, %c2, %c0_27, %c0_28], %64 {strides = array<i32>} : memref<1x25x4x256xf32, #tpu.memory_space<vmem>>, vector<1x1x4x256xf32>,
    %c0_29 = arith.constant 0 : index
    %c97 = arith.constant 97 : index
    %65 = vector.load %arg3[%c0_29, %c97] : memref<4x418xf32, #tpu.memory_space<vmem>>, vector<4x256xf32>
    %66 = arith.mulf %11, %65 : vector<4x256xf32>
    %cst_30 = arith.constant 0.000000e+00 : f32
    %67 = vector.shape_cast %39 : vector<1x256xi1> to vector<1x256xi1>
    %68 = vector.broadcast %67 : vector<1x256xi1> to vector<4x256xi1>
    %69 = vector.broadcast %cst_30 : f32 to vector<4x256xf32>
    %70 = arith.select %68, %66, %69 : vector<4x256xi1>, vector<4x256xf32>
    %c0_31 = arith.constant 0 : index
    %c3 = arith.constant 3 : index
    %c0_32 = arith.constant 0 : index
    %c0_33 = arith.constant 0 : index
    %71 = vector.load %arg2[%c0_31, %c3, %c0_32, %c0_33] : memref<1x25x4x256xf32, #tpu.memory_space<vmem>>, vector<1x1x4x256xf32>
    %72 = vector.shape_cast %71 : vector<1x1x4x256xf32> to vector<4x256xf32>
    %73 = vector.shape_cast %70 : vector<4x256xf32> to vector<1x1x4x256xf32>
    tpu.vector_store %arg2[%c0_31, %c3, %c0_32, %c0_33], %73 {strides = array<i32>} : memref<1x25x4x256xf32, #tpu.memory_space<vmem>>, vector<1x1x4x256xf32>,
    %c0_34 = arith.constant 0 : index
    %c98 = arith.constant 98 : index
    %74 = vector.load %arg3[%c0_34, %c98] : memref<4x418xf32, #tpu.memory_space<vmem>>, vector<4x256xf32>
    %75 = arith.mulf %11, %74 : vector<4x256xf32>
    %cst_35 = arith.constant 0.000000e+00 : f32
    %76 = vector.shape_cast %41 : vector<1x256xi1> to vector<1x256xi1>
    %77 = vector.broadcast %76 : vector<1x256xi1> to vector<4x256xi1>
    %78 = vector.broadcast %cst_35 : f32 to vector<4x256xf32>
    %79 = arith.select %77, %75, %78 : vector<4x256xi1>, vector<4x256xf32>
    %c0_36 = arith.constant 0 : index
    %c4 = arith.constant 4 : index
    %c0_37 = arith.constant 0 : index
    %c0_38 = arith.constant 0 : index
    %80 = vector.load %arg2[%c0_36, %c4, %c0_37, %c0_38] : memref<1x25x4x256xf32, #tpu.memory_space<vmem>>, vector<1x1x4x256xf32>
    %81 = vector.shape_cast %80 : vector<1x1x4x256xf32> to vector<4x256xf32>
    %82 = vector.shape_cast %79 : vector<4x256xf32> to vector<1x1x4x256xf32>
    tpu.vector_store %arg2[%c0_36, %c4, %c0_37, %c0_38], %82 {strides = array<i32>} : memref<1x25x4x256xf32, #tpu.memory_space<vmem>>, vector<1x1x4x256xf32>,
    %c0_39 = arith.constant 0 : index
    %c110 = arith.constant 110 : index
    %83 = vector.load %arg3[%c0_39, %c110] : memref<4x418xf32, #tpu.memory_space<vmem>>, vector<4x256xf32>
    %84 = arith.mulf %11, %83 : vector<4x256xf32>
    %cst_40 = arith.constant 0.000000e+00 : f32
    %85 = vector.shape_cast %35 : vector<1x256xi1> to vector<1x256xi1>
    %86 = vector.broadcast %85 : vector<1x256xi1> to vector<4x256xi1>
    %87 = vector.broadcast %cst_40 : f32 to vector<4x256xf32>
    %88 = arith.select %86, %84, %87 : vector<4x256xi1>, vector<4x256xf32>
    %c0_41 = arith.constant 0 : index
    %c5 = arith.constant 5 : index
    %c0_42 = arith.constant 0 : index
    %c0_43 = arith.constant 0 : index
    %89 = vector.load %arg2[%c0_41, %c5, %c0_42, %c0_43] : memref<1x25x4x256xf32, #tpu.memory_space<vmem>>, vector<1x1x4x256xf32>
    %90 = vector.shape_cast %89 : vector<1x1x4x256xf32> to vector<4x256xf32>
    %91 = vector.shape_cast %88 : vector<4x256xf32> to vector<1x1x4x256xf32>
    tpu.vector_store %arg2[%c0_41, %c5, %c0_42, %c0_43], %91 {strides = array<i32>} : memref<1x25x4x256xf32, #tpu.memory_space<vmem>>, vector<1x1x4x256xf32>,
    %c0_44 = arith.constant 0 : index
    %c111 = arith.constant 111 : index
    %92 = vector.load %arg3[%c0_44, %c111] : memref<4x418xf32, #tpu.memory_space<vmem>>, vector<4x256xf32>
    %93 = arith.mulf %11, %92 : vector<4x256xf32>
    %cst_45 = arith.constant 0.000000e+00 : f32
    %94 = vector.shape_cast %37 : vector<1x256xi1> to vector<1x256xi1>
    %95 = vector.broadcast %94 : vector<1x256xi1> to vector<4x256xi1>
    %96 = vector.broadcast %cst_45 : f32 to vector<4x256xf32>
    %97 = arith.select %95, %93, %96 : vector<4x256xi1>, vector<4x256xf32>
    %c0_46 = arith.constant 0 : index
    %c6 = arith.constant 6 : index
    %c0_47 = arith.constant 0 : index
    %c0_48 = arith.constant 0 : index
    %98 = vector.load %arg2[%c0_46, %c6, %c0_47, %c0_48] : memref<1x25x4x256xf32, #tpu.memory_space<vmem>>, vector<1x1x4x256xf32>
    %99 = vector.shape_cast %98 : vector<1x1x4x256xf32> to vector<4x256xf32>
    %100 = vector.shape_cast %97 : vector<4x256xf32> to vector<1x1x4x256xf32>
    tpu.vector_store %arg2[%c0_46, %c6, %c0_47, %c0_48], %100 {strides = array<i32>} : memref<1x25x4x256xf32, #tpu.memory_space<vmem>>, vector<1x1x4x256xf32>,
    %c0_49 = arith.constant 0 : index
    %c112 = arith.constant 112 : index
    %101 = vector.load %arg3[%c0_49, %c112] : memref<4x418xf32, #tpu.memory_space<vmem>>, vector<4x256xf32>
    %102 = arith.mulf %11, %101 : vector<4x256xf32>
    %c0_50 = arith.constant 0 : index
    %c7 = arith.constant 7 : index
    %c0_51 = arith.constant 0 : index
    %c0_52 = arith.constant 0 : index
    %103 = vector.load %arg2[%c0_50, %c7, %c0_51, %c0_52] : memref<1x25x4x256xf32, #tpu.memory_space<vmem>>, vector<1x1x4x256xf32>
    %104 = vector.shape_cast %103 : vector<1x1x4x256xf32> to vector<4x256xf32>
    %105 = vector.shape_cast %102 : vector<4x256xf32> to vector<1x1x4x256xf32>
    tpu.vector_store %arg2[%c0_50, %c7, %c0_51, %c0_52], %105 {strides = array<i32>} : memref<1x25x4x256xf32, #tpu.memory_space<vmem>>, vector<1x1x4x256xf32>,
    %c0_53 = arith.constant 0 : index
    %c113 = arith.constant 113 : index
    %106 = vector.load %arg3[%c0_53, %c113] : memref<4x418xf32, #tpu.memory_space<vmem>>, vector<4x256xf32>
    %107 = arith.mulf %11, %106 : vector<4x256xf32>
    %cst_54 = arith.constant 0.000000e+00 : f32
    %108 = vector.shape_cast %39 : vector<1x256xi1> to vector<1x256xi1>
    %109 = vector.broadcast %108 : vector<1x256xi1> to vector<4x256xi1>
    %110 = vector.broadcast %cst_54 : f32 to vector<4x256xf32>
    %111 = arith.select %109, %107, %110 : vector<4x256xi1>, vector<4x256xf32>
    %c0_55 = arith.constant 0 : index
    %c8 = arith.constant 8 : index
    %c0_56 = arith.constant 0 : index
    %c0_57 = arith.constant 0 : index
    %112 = vector.load %arg2[%c0_55, %c8, %c0_56, %c0_57] : memref<1x25x4x256xf32, #tpu.memory_space<vmem>>, vector<1x1x4x256xf32>
    %113 = vector.shape_cast %112 : vector<1x1x4x256xf32> to vector<4x256xf32>
    %114 = vector.shape_cast %111 : vector<4x256xf32> to vector<1x1x4x256xf32>
    tpu.vector_store %arg2[%c0_55, %c8, %c0_56, %c0_57], %114 {strides = array<i32>} : memref<1x25x4x256xf32, #tpu.memory_space<vmem>>, vector<1x1x4x256xf32>,
    %c0_58 = arith.constant 0 : index
    %c114 = arith.constant 114 : index
    %115 = vector.load %arg3[%c0_58, %c114] : memref<4x418xf32, #tpu.memory_space<vmem>>, vector<4x256xf32>
    %116 = arith.mulf %11, %115 : vector<4x256xf32>
    %cst_59 = arith.constant 0.000000e+00 : f32
    %117 = vector.shape_cast %41 : vector<1x256xi1> to vector<1x256xi1>
    %118 = vector.broadcast %117 : vector<1x256xi1> to vector<4x256xi1>
    %119 = vector.broadcast %cst_59 : f32 to vector<4x256xf32>
    %120 = arith.select %118, %116, %119 : vector<4x256xi1>, vector<4x256xf32>
    %c0_60 = arith.constant 0 : index
    %c9 = arith.constant 9 : index
    %c0_61 = arith.constant 0 : index
    %c0_62 = arith.constant 0 : index
    %121 = vector.load %arg2[%c0_60, %c9, %c0_61, %c0_62] : memref<1x25x4x256xf32, #tpu.memory_space<vmem>>, vector<1x1x4x256xf32>
    %122 = vector.shape_cast %121 : vector<1x1x4x256xf32> to vector<4x256xf32>
    %123 = vector.shape_cast %120 : vector<4x256xf32> to vector<1x1x4x256xf32>
    tpu.vector_store %arg2[%c0_60, %c9, %c0_61, %c0_62], %123 {strides = array<i32>} : memref<1x25x4x256xf32, #tpu.memory_space<vmem>>, vector<1x1x4x256xf32>,
    %c0_63 = arith.constant 0 : index
    %c126 = arith.constant 126 : index
    %124 = vector.load %arg3[%c0_63, %c126] : memref<4x418xf32, #tpu.memory_space<vmem>>, vector<4x256xf32>
    %125 = arith.mulf %11, %124 : vector<4x256xf32>
    %cst_64 = arith.constant 0.000000e+00 : f32
    %126 = vector.shape_cast %35 : vector<1x256xi1> to vector<1x256xi1>
    %127 = vector.broadcast %126 : vector<1x256xi1> to vector<4x256xi1>
    %128 = vector.broadcast %cst_64 : f32 to vector<4x256xf32>
    %129 = arith.select %127, %125, %128 : vector<4x256xi1>, vector<4x256xf32>
    %c0_65 = arith.constant 0 : index
    %c10 = arith.constant 10 : index
    %c0_66 = arith.constant 0 : index
    %c0_67 = arith.constant 0 : index
    %130 = vector.load %arg2[%c0_65, %c10, %c0_66, %c0_67] : memref<1x25x4x256xf32, #tpu.memory_space<vmem>>, vector<1x1x4x256xf32>
    %131 = vector.shape_cast %130 : vector<1x1x4x256xf32> to vector<4x256xf32>
    %132 = vector.shape_cast %129 : vector<4x256xf32> to vector<1x1x4x256xf32>
    tpu.vector_store %arg2[%c0_65, %c10, %c0_66, %c0_67], %132 {strides = array<i32>} : memref<1x25x4x256xf32, #tpu.memory_space<vmem>>, vector<1x1x4x256xf32>,
    %c0_68 = arith.constant 0 : index
    %c127 = arith.constant 127 : index
    %133 = vector.load %arg3[%c0_68, %c127] : memref<4x418xf32, #tpu.memory_space<vmem>>, vector<4x256xf32>
    %134 = arith.mulf %11, %133 : vector<4x256xf32>
    %cst_69 = arith.constant 0.000000e+00 : f32
    %135 = vector.shape_cast %37 : vector<1x256xi1> to vector<1x256xi1>
    %136 = vector.broadcast %135 : vector<1x256xi1> to vector<4x256xi1>
    %137 = vector.broadcast %cst_69 : f32 to vector<4x256xf32>
    %138 = arith.select %136, %134, %137 : vector<4x256xi1>, vector<4x256xf32>
    %c0_70 = arith.constant 0 : index
    %c11 = arith.constant 11 : index
    %c0_71 = arith.constant 0 : index
    %c0_72 = arith.constant 0 : index
    %139 = vector.load %arg2[%c0_70, %c11, %c0_71, %c0_72] : memref<1x25x4x256xf32, #tpu.memory_space<vmem>>, vector<1x1x4x256xf32>
    %140 = vector.shape_cast %139 : vector<1x1x4x256xf32> to vector<4x256xf32>
    %141 = vector.shape_cast %138 : vector<4x256xf32> to vector<1x1x4x256xf32>
    tpu.vector_store %arg2[%c0_70, %c11, %c0_71, %c0_72], %141 {strides = array<i32>} : memref<1x25x4x256xf32, #tpu.memory_space<vmem>>, vector<1x1x4x256xf32>,
    %c0_73 = arith.constant 0 : index
    %c128_74 = arith.constant 128 : index
    %142 = vector.load %arg3[%c0_73, %c128_74] : memref<4x418xf32, #tpu.memory_space<vmem>>, vector<4x256xf32>
    %143 = arith.mulf %11, %142 : vector<4x256xf32>
    %c0_75 = arith.constant 0 : index
    %c12 = arith.constant 12 : index
    %c0_76 = arith.constant 0 : index
    %c0_77 = arith.constant 0 : index
    %144 = vector.load %arg2[%c0_75, %c12, %c0_76, %c0_77] : memref<1x25x4x256xf32, #tpu.memory_space<vmem>>, vector<1x1x4x256xf32>
    %145 = vector.shape_cast %144 : vector<1x1x4x256xf32> to vector<4x256xf32>
    %146 = vector.shape_cast %143 : vector<4x256xf32> to vector<1x1x4x256xf32>
    tpu.vector_store %arg2[%c0_75, %c12, %c0_76, %c0_77], %146 {strides = array<i32>} : memref<1x25x4x256xf32, #tpu.memory_space<vmem>>, vector<1x1x4x256xf32>,
    %c0_78 = arith.constant 0 : index
    %c129 = arith.constant 129 : index
    %147 = vector.load %arg3[%c0_78, %c129] : memref<4x418xf32, #tpu.memory_space<vmem>>, vector<4x256xf32>
    %148 = arith.mulf %11, %147 : vector<4x256xf32>
    %cst_79 = arith.constant 0.000000e+00 : f32
    %149 = vector.shape_cast %39 : vector<1x256xi1> to vector<1x256xi1>
    %150 = vector.broadcast %149 : vector<1x256xi1> to vector<4x256xi1>
    %151 = vector.broadcast %cst_79 : f32 to vector<4x256xf32>
    %152 = arith.select %150, %148, %151 : vector<4x256xi1>, vector<4x256xf32>
    %c0_80 = arith.constant 0 : index
    %c13 = arith.constant 13 : index
    %c0_81 = arith.constant 0 : index
    %c0_82 = arith.constant 0 : index
    %153 = vector.load %arg2[%c0_80, %c13, %c0_81, %c0_82] : memref<1x25x4x256xf32, #tpu.memory_space<vmem>>, vector<1x1x4x256xf32>
    %154 = vector.shape_cast %153 : vector<1x1x4x256xf32> to vector<4x256xf32>
    %155 = vector.shape_cast %152 : vector<4x256xf32> to vector<1x1x4x256xf32>
    tpu.vector_store %arg2[%c0_80, %c13, %c0_81, %c0_82], %155 {strides = array<i32>} : memref<1x25x4x256xf32, #tpu.memory_space<vmem>>, vector<1x1x4x256xf32>,
    %c0_83 = arith.constant 0 : index
    %c130 = arith.constant 130 : index
    %156 = vector.load %arg3[%c0_83, %c130] : memref<4x418xf32, #tpu.memory_space<vmem>>, vector<4x256xf32>
    %157 = arith.mulf %11, %156 : vector<4x256xf32>
    %cst_84 = arith.constant 0.000000e+00 : f32
    %158 = vector.shape_cast %41 : vector<1x256xi1> to vector<1x256xi1>
    %159 = vector.broadcast %158 : vector<1x256xi1> to vector<4x256xi1>
    %160 = vector.broadcast %cst_84 : f32 to vector<4x256xf32>
    %161 = arith.select %159, %157, %160 : vector<4x256xi1>, vector<4x256xf32>
    %c0_85 = arith.constant 0 : index
    %c14 = arith.constant 14 : index
    %c0_86 = arith.constant 0 : index
    %c0_87 = arith.constant 0 : index
    %162 = vector.load %arg2[%c0_85, %c14, %c0_86, %c0_87] : memref<1x25x4x256xf32, #tpu.memory_space<vmem>>, vector<1x1x4x256xf32>
    %163 = vector.shape_cast %162 : vector<1x1x4x256xf32> to vector<4x256xf32>
    %164 = vector.shape_cast %161 : vector<4x256xf32> to vector<1x1x4x256xf32>
    tpu.vector_store %arg2[%c0_85, %c14, %c0_86, %c0_87], %164 {strides = array<i32>} : memref<1x25x4x256xf32, #tpu.memory_space<vmem>>, vector<1x1x4x256xf32>,
    %c0_88 = arith.constant 0 : index
    %c142 = arith.constant 142 : index
    %165 = vector.load %arg3[%c0_88, %c142] : memref<4x418xf32, #tpu.memory_space<vmem>>, vector<4x256xf32>
    %166 = arith.mulf %11, %165 : vector<4x256xf32>
    %cst_89 = arith.constant 0.000000e+00 : f32
    %167 = vector.shape_cast %35 : vector<1x256xi1> to vector<1x256xi1>
    %168 = vector.broadcast %167 : vector<1x256xi1> to vector<4x256xi1>
    %169 = vector.broadcast %cst_89 : f32 to vector<4x256xf32>
    %170 = arith.select %168, %166, %169 : vector<4x256xi1>, vector<4x256xf32>
    %c0_90 = arith.constant 0 : index
    %c15 = arith.constant 15 : index
    %c0_91 = arith.constant 0 : index
    %c0_92 = arith.constant 0 : index
    %171 = vector.load %arg2[%c0_90, %c15, %c0_91, %c0_92] : memref<1x25x4x256xf32, #tpu.memory_space<vmem>>, vector<1x1x4x256xf32>
    %172 = vector.shape_cast %171 : vector<1x1x4x256xf32> to vector<4x256xf32>
    %173 = vector.shape_cast %170 : vector<4x256xf32> to vector<1x1x4x256xf32>
    tpu.vector_store %arg2[%c0_90, %c15, %c0_91, %c0_92], %173 {strides = array<i32>} : memref<1x25x4x256xf32, #tpu.memory_space<vmem>>, vector<1x1x4x256xf32>,
    %c0_93 = arith.constant 0 : index
    %c143 = arith.constant 143 : index
    %174 = vector.load %arg3[%c0_93, %c143] : memref<4x418xf32, #tpu.memory_space<vmem>>, vector<4x256xf32>
    %175 = arith.mulf %11, %174 : vector<4x256xf32>
    %cst_94 = arith.constant 0.000000e+00 : f32
    %176 = vector.shape_cast %37 : vector<1x256xi1> to vector<1x256xi1>
    %177 = vector.broadcast %176 : vector<1x256xi1> to vector<4x256xi1>
    %178 = vector.broadcast %cst_94 : f32 to vector<4x256xf32>
    %179 = arith.select %177, %175, %178 : vector<4x256xi1>, vector<4x256xf32>
    %c0_95 = arith.constant 0 : index
    %c16 = arith.constant 16 : index
    %c0_96 = arith.constant 0 : index
    %c0_97 = arith.constant 0 : index
    %180 = vector.load %arg2[%c0_95, %c16, %c0_96, %c0_97] : memref<1x25x4x256xf32, #tpu.memory_space<vmem>>, vector<1x1x4x256xf32>
    %181 = vector.shape_cast %180 : vector<1x1x4x256xf32> to vector<4x256xf32>
    %182 = vector.shape_cast %179 : vector<4x256xf32> to vector<1x1x4x256xf32>
    tpu.vector_store %arg2[%c0_95, %c16, %c0_96, %c0_97], %182 {strides = array<i32>} : memref<1x25x4x256xf32, #tpu.memory_space<vmem>>, vector<1x1x4x256xf32>,
    %c0_98 = arith.constant 0 : index
    %c144 = arith.constant 144 : index
    %183 = vector.load %arg3[%c0_98, %c144] : memref<4x418xf32, #tpu.memory_space<vmem>>, vector<4x256xf32>
    %184 = arith.mulf %11, %183 : vector<4x256xf32>
    %c0_99 = arith.constant 0 : index
    %c17 = arith.constant 17 : index
    %c0_100 = arith.constant 0 : index
    %c0_101 = arith.constant 0 : index
    %185 = vector.load %arg2[%c0_99, %c17, %c0_100, %c0_101] : memref<1x25x4x256xf32, #tpu.memory_space<vmem>>, vector<1x1x4x256xf32>
    %186 = vector.shape_cast %185 : vector<1x1x4x256xf32> to vector<4x256xf32>
    %187 = vector.shape_cast %184 : vector<4x256xf32> to vector<1x1x4x256xf32>
    tpu.vector_store %arg2[%c0_99, %c17, %c0_100, %c0_101], %187 {strides = array<i32>} : memref<1x25x4x256xf32, #tpu.memory_space<vmem>>, vector<1x1x4x256xf32>,
    %c0_102 = arith.constant 0 : index
    %c145 = arith.constant 145 : index
    %188 = vector.load %arg3[%c0_102, %c145] : memref<4x418xf32, #tpu.memory_space<vmem>>, vector<4x256xf32>
    %189 = arith.mulf %11, %188 : vector<4x256xf32>
    %cst_103 = arith.constant 0.000000e+00 : f32
    %190 = vector.shape_cast %39 : vector<1x256xi1> to vector<1x256xi1>
    %191 = vector.broadcast %190 : vector<1x256xi1> to vector<4x256xi1>
    %192 = vector.broadcast %cst_103 : f32 to vector<4x256xf32>
    %193 = arith.select %191, %189, %192 : vector<4x256xi1>, vector<4x256xf32>
    %c0_104 = arith.constant 0 : index
    %c18 = arith.constant 18 : index
    %c0_105 = arith.constant 0 : index
    %c0_106 = arith.constant 0 : index
    %194 = vector.load %arg2[%c0_104, %c18, %c0_105, %c0_106] : memref<1x25x4x256xf32, #tpu.memory_space<vmem>>, vector<1x1x4x256xf32>
    %195 = vector.shape_cast %194 : vector<1x1x4x256xf32> to vector<4x256xf32>
    %196 = vector.shape_cast %193 : vector<4x256xf32> to vector<1x1x4x256xf32>
    tpu.vector_store %arg2[%c0_104, %c18, %c0_105, %c0_106], %196 {strides = array<i32>} : memref<1x25x4x256xf32, #tpu.memory_space<vmem>>, vector<1x1x4x256xf32>,
    %c0_107 = arith.constant 0 : index
    %c146 = arith.constant 146 : index
    %197 = vector.load %arg3[%c0_107, %c146] : memref<4x418xf32, #tpu.memory_space<vmem>>, vector<4x256xf32>
    %198 = arith.mulf %11, %197 : vector<4x256xf32>
    %cst_108 = arith.constant 0.000000e+00 : f32
    %199 = vector.shape_cast %41 : vector<1x256xi1> to vector<1x256xi1>
    %200 = vector.broadcast %199 : vector<1x256xi1> to vector<4x256xi1>
    %201 = vector.broadcast %cst_108 : f32 to vector<4x256xf32>
    %202 = arith.select %200, %198, %201 : vector<4x256xi1>, vector<4x256xf32>
    %c0_109 = arith.constant 0 : index
    %c19 = arith.constant 19 : index
    %c0_110 = arith.constant 0 : index
    %c0_111 = arith.constant 0 : index
    %203 = vector.load %arg2[%c0_109, %c19, %c0_110, %c0_111] : memref<1x25x4x256xf32, #tpu.memory_space<vmem>>, vector<1x1x4x256xf32>
    %204 = vector.shape_cast %203 : vector<1x1x4x256xf32> to vector<4x256xf32>
    %205 = vector.shape_cast %202 : vector<4x256xf32> to vector<1x1x4x256xf32>
    tpu.vector_store %arg2[%c0_109, %c19, %c0_110, %c0_111], %205 {strides = array<i32>} : memref<1x25x4x256xf32, #tpu.memory_space<vmem>>, vector<1x1x4x256xf32>,
    %c0_112 = arith.constant 0 : index
    %c158 = arith.constant 158 : index
    %206 = vector.load %arg3[%c0_112, %c158] : memref<4x418xf32, #tpu.memory_space<vmem>>, vector<4x256xf32>
    %207 = arith.mulf %11, %206 : vector<4x256xf32>
    %cst_113 = arith.constant 0.000000e+00 : f32
    %208 = vector.shape_cast %35 : vector<1x256xi1> to vector<1x256xi1>
    %209 = vector.broadcast %208 : vector<1x256xi1> to vector<4x256xi1>
    %210 = vector.broadcast %cst_113 : f32 to vector<4x256xf32>
    %211 = arith.select %209, %207, %210 : vector<4x256xi1>, vector<4x256xf32>
    %c0_114 = arith.constant 0 : index
    %c20 = arith.constant 20 : index
    %c0_115 = arith.constant 0 : index
    %c0_116 = arith.constant 0 : index
    %212 = vector.load %arg2[%c0_114, %c20, %c0_115, %c0_116] : memref<1x25x4x256xf32, #tpu.memory_space<vmem>>, vector<1x1x4x256xf32>
    %213 = vector.shape_cast %212 : vector<1x1x4x256xf32> to vector<4x256xf32>
    %214 = vector.shape_cast %211 : vector<4x256xf32> to vector<1x1x4x256xf32>
    tpu.vector_store %arg2[%c0_114, %c20, %c0_115, %c0_116], %214 {strides = array<i32>} : memref<1x25x4x256xf32, #tpu.memory_space<vmem>>, vector<1x1x4x256xf32>,
    %c0_117 = arith.constant 0 : index
    %c159 = arith.constant 159 : index
    %215 = vector.load %arg3[%c0_117, %c159] : memref<4x418xf32, #tpu.memory_space<vmem>>, vector<4x256xf32>
    %216 = arith.mulf %11, %215 : vector<4x256xf32>
    %cst_118 = arith.constant 0.000000e+00 : f32
    %217 = vector.shape_cast %37 : vector<1x256xi1> to vector<1x256xi1>
    %218 = vector.broadcast %217 : vector<1x256xi1> to vector<4x256xi1>
    %219 = vector.broadcast %cst_118 : f32 to vector<4x256xf32>
    %220 = arith.select %218, %216, %219 : vector<4x256xi1>, vector<4x256xf32>
    %c0_119 = arith.constant 0 : index
    %c21 = arith.constant 21 : index
    %c0_120 = arith.constant 0 : index
    %c0_121 = arith.constant 0 : index
    %221 = vector.load %arg2[%c0_119, %c21, %c0_120, %c0_121] : memref<1x25x4x256xf32, #tpu.memory_space<vmem>>, vector<1x1x4x256xf32>
    %222 = vector.shape_cast %221 : vector<1x1x4x256xf32> to vector<4x256xf32>
    %223 = vector.shape_cast %220 : vector<4x256xf32> to vector<1x1x4x256xf32>
    tpu.vector_store %arg2[%c0_119, %c21, %c0_120, %c0_121], %223 {strides = array<i32>} : memref<1x25x4x256xf32, #tpu.memory_space<vmem>>, vector<1x1x4x256xf32>,
    %c0_122 = arith.constant 0 : index
    %c160 = arith.constant 160 : index
    %224 = vector.load %arg3[%c0_122, %c160] : memref<4x418xf32, #tpu.memory_space<vmem>>, vector<4x256xf32>
    %225 = arith.mulf %11, %224 : vector<4x256xf32>
    %c0_123 = arith.constant 0 : index
    %c22 = arith.constant 22 : index
    %c0_124 = arith.constant 0 : index
    %c0_125 = arith.constant 0 : index
    %226 = vector.load %arg2[%c0_123, %c22, %c0_124, %c0_125] : memref<1x25x4x256xf32, #tpu.memory_space<vmem>>, vector<1x1x4x256xf32>
    %227 = vector.shape_cast %226 : vector<1x1x4x256xf32> to vector<4x256xf32>
    %228 = vector.shape_cast %225 : vector<4x256xf32> to vector<1x1x4x256xf32>
    tpu.vector_store %arg2[%c0_123, %c22, %c0_124, %c0_125], %228 {strides = array<i32>} : memref<1x25x4x256xf32, #tpu.memory_space<vmem>>, vector<1x1x4x256xf32>,
    %c0_126 = arith.constant 0 : index
    %c161 = arith.constant 161 : index
    %229 = vector.load %arg3[%c0_126, %c161] : memref<4x418xf32, #tpu.memory_space<vmem>>, vector<4x256xf32>
    %230 = arith.mulf %11, %229 : vector<4x256xf32>
    %cst_127 = arith.constant 0.000000e+00 : f32
    %231 = vector.shape_cast %39 : vector<1x256xi1> to vector<1x256xi1>
    %232 = vector.broadcast %231 : vector<1x256xi1> to vector<4x256xi1>
    %233 = vector.broadcast %cst_127 : f32 to vector<4x256xf32>
    %234 = arith.select %232, %230, %233 : vector<4x256xi1>, vector<4x256xf32>
    %c0_128 = arith.constant 0 : index
    %c23 = arith.constant 23 : index
    %c0_129 = arith.constant 0 : index
    %c0_130 = arith.constant 0 : index
    %235 = vector.load %arg2[%c0_128, %c23, %c0_129, %c0_130] : memref<1x25x4x256xf32, #tpu.memory_space<vmem>>, vector<1x1x4x256xf32>
    %236 = vector.shape_cast %235 : vector<1x1x4x256xf32> to vector<4x256xf32>
    %237 = vector.shape_cast %234 : vector<4x256xf32> to vector<1x1x4x256xf32>
    tpu.vector_store %arg2[%c0_128, %c23, %c0_129, %c0_130], %237 {strides = array<i32>} : memref<1x25x4x256xf32, #tpu.memory_space<vmem>>, vector<1x1x4x256xf32>,
    %c0_131 = arith.constant 0 : index
    %c162 = arith.constant 162 : index
    %238 = vector.load %arg3[%c0_131, %c162] : memref<4x418xf32, #tpu.memory_space<vmem>>, vector<4x256xf32>
    %239 = arith.mulf %11, %238 : vector<4x256xf32>
    %cst_132 = arith.constant 0.000000e+00 : f32
    %240 = vector.shape_cast %41 : vector<1x256xi1> to vector<1x256xi1>
    %241 = vector.broadcast %240 : vector<1x256xi1> to vector<4x256xi1>
    %242 = vector.broadcast %cst_132 : f32 to vector<4x256xf32>
    %243 = arith.select %241, %239, %242 : vector<4x256xi1>, vector<4x256xf32>
    %c0_133 = arith.constant 0 : index
    %c24 = arith.constant 24 : index
    %c0_134 = arith.constant 0 : index
    %c0_135 = arith.constant 0 : index
    %244 = vector.load %arg2[%c0_133, %c24, %c0_134, %c0_135] : memref<1x25x4x256xf32, #tpu.memory_space<vmem>>, vector<1x1x4x256xf32>
    %245 = vector.shape_cast %244 : vector<1x1x4x256xf32> to vector<4x256xf32>
    %246 = vector.shape_cast %243 : vector<4x256xf32> to vector<1x1x4x256xf32>
    tpu.vector_store %arg2[%c0_133, %c24, %c0_134, %c0_135], %246 {strides = array<i32>} : memref<1x25x4x256xf32, #tpu.memory_space<vmem>>, vector<1x1x4x256xf32>,
    return
  }
  func.func @transform_0(%arg0: i32) -> (i32, i32, i32) {
    %c0_i32 = arith.constant 0 : i32
    %c0_i32_0 = arith.constant 0 : i32
    %c0_i32_1 = arith.constant 0 : i32
    return %arg0, %c0_i32, %c0_i32_0 : i32, i32, i32
  }
  func.func @transform_1(%arg0: i32) -> (i32, i32, i32, i32) {
    %c0_i32 = arith.constant 0 : i32
    %c0_i32_0 = arith.constant 0 : i32
    %c0_i32_1 = arith.constant 0 : i32
    %c0_i32_2 = arith.constant 0 : i32
    return %arg0, %c0_i32, %c0_i32_0, %c0_i32_1 : i32, i32, i32, i32
  }
}

</mosaic_0001>

<bundles_post_ra>
// kernel: tpu_custom_call.1
= control target key start
LH: loop header
LB: loop body
LE: loop exit
PB: predicated region body
PF: predicated region fallthrough
CT: control target
= control target key end

     0   :  { %6 = vsyncpa [#allocation4], 0  ;;  %s1518_s0 = inlined_call_operand.hbm [shape: f32[2,4,256], index: 0, kind: input, shape index: {}]   ;;  %s1519_s1 = inlined_call_operand.hbm [shape: f32[2,25,4,256], index: 1, kind: output, shape index: {}]  }
   0x1   :  { %8 = vsyncpa [#allocation4 + $0x1], 0 }
   0x2   :  { %9 = vsyncpa [#allocation5], 0 }
   0x3   :  { %11 = vsyncpa [#allocation5 + $0x1], 0  ;;  %s1145_s6 = smov 0   ;;  %s1147_s7 = smov 0  }
   0x4   :  { %s1149_s8 = smov 0   ;;  %s1151_s9 = smov 0  }
   0x5 LB: > { %s1166_s10 = sadd.s32 4294967295, %s1104_s9   ;;  %s897_s11 = sadd.s32 4294967294, %s1104_s9   ;;  %s1104_s9 = sphi %s1151_s9, %s1536_s9   ;;  %s1100_s8 = sphi %s1149_s8, %s1535_s8   ;;  %s1096_s7 = sphi %s1147_s7, %s1534_s7   ;;  %s1092_s6 = sphi %s1145_s6, %s1533_s6  }
   0x6   : > { %s1170_s12 = sadd.s32 1, %s1104_s9   ;;  %s24_s13 = sadd.s32 1, %s1100_s8 }
   0x7   : > { %s21_s14 = ssub.s32 %s1104_s9, %s1170_s12  ;;  %p31_p0 = scmp.ne.s32.totalorder %s1100_s8, %s1096_s7 }
   0x8   : > { %p22_p1 = scmp.eq.s32.totalorder %s21_s14, 0  ;;  %p32_p2 = scmp.eq.s32.totalorder %s1104_s9, 0 }
   0x9   : > { %p37_p3 = scmp.ne.s32.totalorder %s1096_s7, %s1092_s6  ;;  %p38_p4 = scmp.eq.s32.totalorder %s1166_s10, 0 }
   0xa   : > { %s1182_s15 = scalar_select %p22_p1, %s1100_s8, %s24_s13  }
   0xb   : > { %p1184_p5 = por %p32_p2, %p31_p0  ;;  %p1188_p6 = por %p38_p4, %p37_p3 }
   0xc   : > { %p61_p7 = scmp.eq.s32.totalorder %s1166_s10, 1  ;;  %p67_p8 = scmp.eq.s32.totalorder %s897_s11, 1 }
   0xd   : > { %s1523_s17 = scalar_select %p1188_p6, 1, 0 }
   0xe   : > { %p947_p10 = scmp.lt.s32.totalorder %s1104_s9, 2  ;;  %p1195_p11 = por %p61_p7, %p31_p0 }
   0xf   : > { %p1199_p12 = por %p67_p8, %p37_p3  ;;  %s87_s20 = sand.u32 1, %s1100_s8  }
  0x10   : > { %s1524_s18 = scalar_select %p1195_p11, 1, 0 }
  0x11   : > { %s1525_s19 = scalar_select %p1199_p12, 1, 0 }
  0x12   : > { %s932_s21 = sshll.u32 %s1104_s9, 7  ;;  %s900_s22 = sshll.u32 %s87_s20, 3 }
  0x13   : > { %s1208_s25 = scalar_lea.hbm %s1518_s0, %s932_s21  ;;  %s91_s26 = scalar_lea.vmem [#allocation3], %s900_s22 }
  0x14   : > { %s99_s27 = sshll.u32 %s91_s26, 4  ;;  %p1212_p13 = pnand %p947_p10, %p1184_p5  ;;  %s1216_s27 = int_to_ptr.vmem [resolvable:$true] %s99_s27 }
  0x15   : > { %s88_s29 = scalar_lea.sflag [#allocation4], %s87_s20  ;;  %s1012_s30 = scalar_lea.hbm %s1208_s25, 128 }
  0x16   : > { %p1013_p2 = scmp.ne.s32.totalorder %s1208_s25, %s1012_s30  ;;  %p1014_p3 = pneg %p1212_p13 }
  0x17   : > { %s1017_s4 = scalar_lea.hbm %s1518_s0, 256  ;;  %p1018_p5 = scmp.lt.s32.totalorder %s1208_s25, %s1518_s0 }
  0x18   : > { %p1015_p4 = pnand %p1014_p3, %p1013_p2  ;;  %p1019_p8 = scmp.lt.s32.totalorder %s1017_s4, %s1012_s30 }
  0x1a   : > { %p1016_p7 = pneg %p1015_p4  ;;  %p1020_p10 = por %p1019_p8, %p1018_p5 }
  0x1c   : > { %p1021_p9 = pnand %p1020_p10, %p1016_p7 }
  0x1e   : > { %1024 = shalt.err (!%p1021_p9)
}
  0x1f   : > { %s1025_s13 = scalar_lea.vmem %s1216_s27, 128  ;;  %s1106_s14 = smov [#allocation3]  }
  0x20   : > { %p1026_p0 = scmp.ne.s32.totalorder %s1216_s27, %s1025_s13  ;;  %s1030_s16 = sshll.u32 %s1106_s14, 4  ;;  %s1031_s16 = int_to_ptr.vmem [resolvable:$false] %s1030_s16 }
  0x21   : > { %s1032_s20 = scalar_lea.vmem %s1031_s16, 256  ;;  %p1033_p4 = scmp.lt.s32.totalorder %s1216_s27, %s1031_s16 }
  0x22   : > { %p1028_p1 = pnand %p1026_p0, %p1014_p3  ;;  %p1034_p12 = scmp.lt.s32.totalorder %s1032_s20, %s1025_s13 }
  0x24   : > { %p1029_p2 = pneg %p1028_p1  ;;  %p1035_p11 = por %p1034_p12, %p1033_p4 }
  0x26   : > { %p1036_p6 = pnand %p1035_p11, %p1029_p2 }
  0x28   : > { %1039 = shalt.err (!%p1036_p6)
}
  0x29   : > { %942 = dma.hbm_to_vmem [thread:$0]  (!%p1212_p13), %s1208_s25, 128, %s1216_s27, %s88_s29  }
  0x2a   : > { %p1527_p9 = scmp.lt.s32.totalorder %s1104_s9, 3  ;;  %p1528_p7 = scmp.ge.s32.totalorder %s1104_s9, 1 }
  0x2c   : > { %p105_p0 = pnand %p1528_p7, %p1527_p9 }
  0x2d   : > { %s1243_s21 = sand.u32 (!%p105_p0), 1, %s1096_s7   ;;  %p1529_p6 = scmp.ne.s32.totalorder (!%p105_p0), %s1523_s17, 0 }
  0x2e   : > { %108 = sbr.rel (%p105_p0) target bundleno = 327 (0x147), region = 24  ;;  %s904_s22 = sshll.u32 (!%p105_p0), %s1243_s21, 3 }
  0x2f   : > { %s111_s23 = scalar_lea.sflag (!%p105_p0), [#allocation4], %s1243_s21  ;;  %s114_s24 = scalar_lea.vmem (!%p105_p0), [#allocation3], %s904_s22 }
  0x33   : > { %1083 = dma.done.wait (%p1529_p6), %s111_s23, 128  }
  0x34   : > { %1085 = vsyncadd (%p1529_p6), %s111_s23, 4294967168  ;;  %vm166_vm0 = vcmask 273408   ;;  %v1107_v0 = vmov 0.0   ;;  %vm164_vm1 = vcmask 1044208   ;;  %v133_v1 = vld [vmem:[%s114_s24] sm:$0xff]  ;;  %s1108_s25 = smov 127   ;;  %v168_v54 = vlaneseq }
  0x35   : > { %167 = vst.msk [vmem:[#allocation2 + $0xc] sm:$0xf] %vm166_vm0, %v1107_v0  ;;  %v134_v3 = vmax.f32 %v133_v1, 0.0  ;;  %vm139_vm2 = vcmask 1043456   ;;  %s1109_s26 = smov 126   ;;  %s1110_s17 = smov 114  }
  0x36   : > { %165 = vst.msk [vmem:[#allocation2] sm:$0xf] %vm164_vm1, %v1107_v0  ;;  %s1111_s27 = smov 33   ;;  %s1112_s28 = smov 34   ;;  %v169_v55 = vand.u32 127, %v168_v54  ;;  %vm243_vm3 = vcmask 269312  }
  0x37   : > { %v135_v5 = vmul.f32 %v134_v3, %v134_v3  ;;  %s1113_s29 = smov 32   ;;  %s1114_s30 = smov 31   ;;  %vm214_vm4 = vcmask 277504   ;;  %vm273_vm9 = vcmask 261120   ;;  %vm290_vm10 = vcmask 252928  }
  0x38   : > { %s1115_s2 = smov 30   ;;  %s1116_s3 = smov 18   ;;  %v170_v58 = vadd.s32 128, %v169_v55  ;;  %v1300_v60 = vand.u32 15, %v169_v55  ;;  %vm320_vm11 = vcmask 244736   ;;  %vm350_vm15 = vcmask 146432  }
  0x39   : > { %v137_v6 = vcombine.high %v135_v5, %v135_v5  ;;  %v140_v7 = vsel %vm139_vm2, %v135_v5, 0.0  ;;  %s1117_s4 = smov 17   ;;  %s1118_s5 = smov 15   ;;  %vm376_vm1 = vcmask 138240  }
  0x3a   : > { %v141_v9 = vrot.slane %v140_v7, 4  ;;  %s1119_s11 = smov 14   ;;  %s1120_s13 = smov 2   ;;  %vm197_vm5 = vcmp.ge.s32.totalorder %v1300_v60, 1  ;;  %vm195_vm6 = vcmp.ge.s32.totalorder %v1300_v60, 2  ;;  %vm199_vm12 = vcmp.lt.s32.totalorder %v1300_v60, 15 }
  0x3b   : > { %v147_v10 = vsel %vm139_vm2, %v137_v6, 0.0  ;;  %s1121_s14 = smov 1   ;;  %s1122_s16 = smov 113   ;;  %vm201_vm14 = vcmp.lt.s32.totalorder %v1300_v60, 14 }
  0x3c   : > { %v517_v2 = vld [vmem:[#allocation2 + $0xc] sm:$0xf]  ;;  %v142_v11 = vadd.f32 %v141_v9, %v140_v7  ;;  %v148_v12 = vrot.slane %v147_v10, 4  ;;  %s1123_s20 = smov 111   ;;  %s1124_s22 = smov 110  }
  0x3d   : > { %522 = vrot.lane.b32.xlu1 %v517_v2, %s1108_s25  ;;  %v543_v4 = vld [vmem:[#allocation2 + $0xc] sm:$0xf]  ;;  %s1125_s23 = smov 98   ;;  %s1126_s24 = smov 97   ;;  %v1302_v2 = vand.u32 15, %v170_v58 }
  0x3e   : > { %v569_v8 = vld [vmem:[#allocation2 + $0xc] sm:$0xf]  ;;  %v143_v13 = vrot.slane %v142_v11, 2  ;;  %v149_v14 = vadd.f32 %v148_v12, %v147_v10  ;;  %p1530_p12 = scmp.ne.s32.totalorder %s1524_s18, 0 }
  0x3f   : > { %v595_v40 = vld [vmem:[#allocation2 + $0xc] sm:$0xf]  ;;  %vm198_vm7 = vcmp.ge.s32.totalorder %v1302_v2, 1  ;;  %vm196_vm8 = vcmp.ge.s32.totalorder %v1302_v2, 2  ;;  %vm200_vm13 = vcmp.lt.s32.totalorder %v1302_v2, 15  ;;  %vm202_vm0 = vcmp.lt.s32.totalorder %v1302_v2, 14 }
  0x40   : > { %v144_v15 = vadd.f32 %v143_v13, %v142_v11  ;;  %v150_v16 = vrot.slane %v149_v14, 2  ;;  %v638_v41 = vld [vmem:[#allocation2 + $0xc] sm:$0xf] }
  0x41   : > { %548 = vrot.lane.b32.xlu1 %v543_v4, %s1109_s26  ;;  %v664_v42 = vld [vmem:[#allocation2 + $0xc] sm:$0xf] }
  0x42   : > { %v145_v17 = vrot.slane %v144_v15, 1  ;;  %v151_v18 = vadd.f32 %v150_v16, %v149_v14  ;;  %v690_v43 = vld [vmem:[#allocation2 + $0xc] sm:$0xf] }
  0x43   : > { %v716_v44 = vld [vmem:[#allocation2 + $0xc] sm:$0xf] }
  0x44   : > { %v146_v19 = vadd.f32 %v145_v17, %v144_v15  ;;  %v152_v20 = vrot.slane %v151_v18, 1  ;;  %v759_v45 = vld [vmem:[#allocation2 + $0xc] sm:$0xf] }
  0x45   : > { %574 = vrot.lane.b32.xlu1 %v569_v8, %s1110_s17  ;;  %v785_v46 = vld [vmem:[#allocation2 + $0xc] sm:$0xf] }
  0x46   : > { %v153_v21 = vadd.f32 %v152_v20, %v151_v18  ;;  %v154_v22 = vmax.f32 %v146_v19, 1e-24  ;;  %v621_v48 = vld [vmem:[#allocation2 + $0xc] sm:$0xf] }
  0x47   : > { %v742_v49 = vld [vmem:[#allocation2 + $0xc] sm:$0xf] }
  0x48   : > { %v155_v23 = vmax.f32 %v153_v21, 1e-24  ;;  %1008 = vrsqrt.f32 %v154_v22 }
  0x4a   : > { %1010 = vrsqrt.f32 %v155_v23 }
  0x55   : > { %v1009_v24 = vpop.eup %1008 }
  0x57   : > { %v1011_v25 = vpop.eup %1010 }
  0x58   : > { %v160_v26 = vcombine.low %v1009_v24, %v1011_v25 }
  0x5a   : > { %v1256_v27 = vmul.f32 %v160_v26, %v134_v3 }
  0x5c   : > { %163 = vst [vmem:[#allocation2 + $0x4] sm:$0xff] %v1256_v27  ;;  %v513_v50 = vmul.f32 %v1256_v27, %v1256_v27 }
  0x63   : > { %v1259_v28 = vld [vmem:[#allocation2] sm:$0xff]  ;;  %v233_v29 = vld [vmem:[#allocation2 + $0x8] sm:$0xf] }
  0x64   : > { %236 = vrot.lane.b32.xlu1 %v1259_v28, %s1111_s27  ;;  %207 = vrot.lane.b32.xlu0 %v1259_v28, %s1112_s28  ;;  %v204_v30 = vld [vmem:[#allocation2 + $0x8] sm:$0xf] }
  0x65   : > { %v263_v31 = vld [vmem:[#allocation2 + $0x8] sm:$0xf] }
  0x66   : > { %v280_v32 = vld [vmem:[#allocation2 + $0x8] sm:$0xf] }
  0x67   : > { %v310_v33 = vld [vmem:[#allocation2 + $0x8] sm:$0xf] }
  0x68   : > { %238 = vrot.lane.b32.xlu1 %v233_v29, %s1111_s27  ;;  %209 = vrot.lane.b32.xlu0 %v204_v30, %s1112_s28  ;;  %v340_v34 = vld [vmem:[#allocation2 + $0x8] sm:$0xf]  ;;  %s1130_s27 = smov 112   ;;  %s1131_s28 = smov 96  }
  0x69   : > { %v366_v35 = vld [vmem:[#allocation2 + $0x8] sm:$0xf] }
  0x6a   : > { %v409_v36 = vld [vmem:[#allocation2 + $0x8] sm:$0xf] }
  0x6b   : > { %v435_v37 = vld [vmem:[#allocation2 + $0x8] sm:$0xf] }
  0x6c   : > { %268 = vrot.lane.b32.xlu1 %v263_v31, %s1113_s29  ;;  %266 = vrot.lane.b32.xlu0 %v1259_v28, %s1113_s29  ;;  %v461_v38 = vld [vmem:[#allocation2 + $0x8] sm:$0xf]  ;;  %s933_s29 = smul.u32 200, %s1243_s21 }
  0x6d   : > { %v487_v39 = vld [vmem:[#allocation2 + $0x8] sm:$0xf] }
  0x6e   : > { %v392_v47 = vld [vmem:[#allocation2 + $0x8] sm:$0xf] }
  0x70   : > { %285 = vrot.lane.b32.xlu1 %v280_v32, %s1114_s30  ;;  %283 = vrot.lane.b32.xlu0 %v1259_v28, %s1114_s30  ;;  %s1289_s30 = scalar_lea.vmem [#allocation6], %s933_s29 }
  0x71   : > { %916 = vst [vmem:[%s1289_s30 + $0x60] sm:$0xff] %v513_v50 }
  0x74   : > { %315 = vrot.lane.b32.xlu1 %v310_v33, %s1115_s2  ;;  %313 = vrot.lane.b32.xlu0 %v1259_v28, %s1115_s2  ;;  %s934_s2 = smul.u32 3200, %s1166_s10  ;;  %s811_s10 = scalar_lea.sflag [#allocation5], %s1243_s21 }
  0x78   : > { %345 = vrot.lane.b32.xlu1 %v340_v34, %s1116_s3  ;;  %343 = vrot.lane.b32.xlu0 %v1259_v28, %s1116_s3  ;;  %s824_s3 = sshll.u32 %s1289_s30, 4  ;;  %s1473_s3 = int_to_ptr.vmem [resolvable:$true] %s824_s3 }
  0x7c   : > { %371 = vrot.lane.b32.xlu1 %v366_v35, %s1117_s4  ;;  %369 = vrot.lane.b32.xlu0 %v1259_v28, %s1117_s4 }
  0x80   : > { %414 = vrot.lane.b32.xlu1 %v409_v36, %s1118_s5  ;;  %412 = vrot.lane.b32.xlu0 %v1259_v28, %s1118_s5 }
  0x84   : > { %440 = vrot.lane.b32.xlu1 %v435_v37, %s1119_s11  ;;  %438 = vrot.lane.b32.xlu0 %v1259_v28, %s1119_s11  ;;  %s1471_s11 = scalar_lea.hbm %s1519_s1, %s934_s2 }
  0x88   : > { %466 = vrot.lane.b32.xlu1 %v461_v38, %s1120_s13  ;;  %464 = vrot.lane.b32.xlu0 %v1259_v28, %s1120_s13  ;;  %s1040_s13 = scalar_lea.vmem %s1473_s3, 3200 }
  0x89   : > { %p1041_p11 = scmp.ne.s32.totalorder %s1473_s3, %s1040_s13 }
  0x8b   : > { %p1042_p13 = pnand %p1041_p11, %p1530_p12 }
  0x8c   : > { %492 = vrot.lane.b32.xlu1 %v487_v39, %s1121_s14  ;;  %490 = vrot.lane.b32.xlu0 %v1259_v28, %s1121_s14  ;;  %s1132_s14 = smov [#allocation6]  }
  0x8d   : > { %p1043_p1 = pneg %p1042_p13 }
  0x90   : > { %520 = vrot.lane.b32.xlu0 %v1256_v27, %s1108_s25  ;;  %600 = vrot.lane.b32.xlu1 %v595_v40, %s1122_s16  ;;  %s1127_s25 = smov 95  }
  0x94   : > { %546 = vrot.lane.b32.xlu0 %v1256_v27, %s1109_s26  ;;  %643 = vrot.lane.b32.xlu1 %v638_v41, %s1123_s20  ;;  %s1128_s26 = smov 94  }
  0x98   : > { %572 = vrot.lane.b32.xlu0 %v1256_v27, %s1110_s17  ;;  %669 = vrot.lane.b32.xlu1 %v664_v42, %s1124_s22  ;;  %s1129_s17 = smov 16  }
  0x9c   : > { %598 = vrot.lane.b32.xlu0 %v1256_v27, %s1122_s16  ;;  %695 = vrot.lane.b32.xlu1 %v690_v43, %s1125_s23  ;;  %s1044_s16 = sshll.u32 %s1132_s14, 4  ;;  %s1045_s16 = int_to_ptr.vmem [resolvable:$false] %s1044_s16 }
  0x9d   : > { %p1047_p3 = scmp.lt.s32.totalorder %s1473_s3, %s1045_s16 }
  0xa0   : > { %641 = vrot.lane.b32.xlu0 %v1256_v27, %s1123_s20  ;;  %721 = vrot.lane.b32.xlu1 %v716_v44, %s1126_s24  ;;  %s1046_s20 = scalar_lea.vmem %s1045_s16, 6400 }
  0xa1   : > { %p1048_p5 = scmp.lt.s32.totalorder %s1046_s20, %s1040_s13 }
  0xa3   : > { %p1049_p8 = por %p1048_p5, %p1047_p3 }
  0xa4   : > { %667 = vrot.lane.b32.xlu0 %v1256_v27, %s1124_s22  ;;  %764 = vrot.lane.b32.xlu1 %v759_v45, %s1127_s25 }
  0xa5   : > { %p1050_p10 = pnand %p1049_p8, %p1043_p1 }
  0xa8   : > { %693 = vrot.lane.b32.xlu0 %v1256_v27, %s1125_s23  ;;  %790 = vrot.lane.b32.xlu1 %v785_v46, %s1128_s26 }
  0xac   : > { %719 = vrot.lane.b32.xlu0 %v1256_v27, %s1126_s24  ;;  %397 = vrot.lane.b32.xlu1 %v392_v47, %s1129_s17 }
  0xaf   : > { %v1294_v51 = vpop.permute.xlu1 %522 }
  0xb0   : > { %762 = vrot.lane.b32.xlu0 %v1256_v27, %s1127_s25  ;;  %626 = vrot.lane.b32.xlu1 %v621_v48, %s1130_s27 }
  0xb3   : > { %v1296_v52 = vpop.permute.xlu1 %548 }
  0xb4   : > { %788 = vrot.lane.b32.xlu0 %v1256_v27, %s1128_s26  ;;  %747 = vrot.lane.b32.xlu1 %v742_v49, %s1131_s28 }
  0xb7   : > { %v1298_v53 = vpop.permute.xlu1 %574 }
  0xb8   : > { %395 = vrot.lane.b32.xlu0 %v1259_v28, %s1129_s17 }
  0xbc   : > { %624 = vrot.lane.b32.xlu0 %v1256_v27, %s1130_s27 }
  0xc0   : > { %745 = vrot.lane.b32.xlu0 %v1256_v27, %s1131_s28 }
  0xd6   : > { %v237_v56 = vpop.permute.xlu1 %236  ;;  %v208_v57 = vpop.permute.xlu0 %207 }
  0xd7   : > { %v240_v59 = vrot.slane %v237_v56, 4  ;;  %v211_v63 = vrot.slane %v208_v57, 4 }
  0xda   : > { %v239_v61 = vpop.permute.xlu1 %238  ;;  %v210_v62 = vpop.permute.xlu0 %209 }
  0xdb   : > { %v241_v0 = vrot.slane %v239_v61, 4  ;;  %v212_v1 = vrot.slane %v210_v62, 4 }
  0xdd   : > { %v242_v3 = vsel %vm139_vm2, %v240_v59, %v241_v0  ;;  %v213_v4 = vsel %vm139_vm2, %v211_v63, %v212_v1 }
  0xde   : > { %v244_v5 = vsel %vm243_vm3, %v237_v56, %v242_v3  ;;  %v215_v6 = vsel %vm214_vm4, %v208_v57, %v213_v4  ;;  %v269_v7 = vpop.permute.xlu1 %268  ;;  %v267_v8 = vpop.permute.xlu0 %266  ;;  %vm419_vm3 = vcmask 121856   ;;  %vm445_vm4 = vcmask 113664  }
  0xdf   : > { %v246_v9 = vmul.f32 %v244_v5, %v1256_v27  ;;  %v217_v10 = vmul.f32 %v215_v6, %v1256_v27  ;;  %v271_v11 = vrot.slane %v269_v7, 4  ;;  %v270_v12 = vrot.slane %v267_v8, 4 }
  0xe1   : > { %v252_v13 = vcombine.high %v246_v9, %v246_v9  ;;  %v254_v14 = vsel %vm197_vm5, %v246_v9, 0.0  ;;  %v223_v15 = vcombine.high %v217_v10, %v217_v10  ;;  %v225_v16 = vsel %vm195_vm6, %v217_v10, 0.0 }
  0xe2   : > { %v272_v17 = vsel %vm139_vm2, %v270_v12, %v271_v11  ;;  %v286_v18 = vpop.permute.xlu1 %285  ;;  %v284_v19 = vpop.permute.xlu0 %283 }
  0xe3   : > { %v255_v20 = vsel %vm198_vm7, %v252_v13, 0.0  ;;  %v226_v21 = vsel %vm196_vm8, %v223_v15, 0.0  ;;  %v274_v22 = vsel %vm273_vm9, %v267_v8, %v272_v17  ;;  %v288_v23 = vrot.slane %v286_v18, 4 }
  0xe4   : > { %v258_v24 = vcombine.low %v254_v14, %v255_v20  ;;  %v229_v25 = vcombine.low %v225_v16, %v226_v21  ;;  %v276_v26 = vmul.f32 %v274_v22, %v1256_v27  ;;  %v287_v28 = vrot.slane %v284_v19, 4 }
  0xe5   : > { %vm471_vm9 = vcmask 15360  }
  0xe6   : > { %905 = vst [vmem:[%s1289_s30 + $0x8] sm:$0xff] %v258_v24  ;;  %231 = vst [vmem:[%s1289_s30] sm:$0xff] %v229_v25  ;;  %v289_v29 = vsel %vm139_vm2, %v287_v28, %v288_v23  ;;  %v316_v30 = vpop.permute.xlu1 %315  ;;  %v314_v31 = vpop.permute.xlu0 %313 }
  0xe7   : > { %906 = vst [vmem:[%s1289_s30 + $0x10] sm:$0xff] %v276_v26  ;;  %v291_v32 = vsel %vm290_vm10, %v284_v19, %v289_v29  ;;  %v318_v33 = vrot.slane %v316_v30, 4  ;;  %v317_v34 = vrot.slane %v314_v31, 4  ;;  %vm497_vm10 = vcmask 7168  }
  0xe8   : > { %v293_v35 = vmul.f32 %v291_v32, %v1256_v27 }
  0xe9   : > { %v319_v36 = vsel %vm139_vm2, %v317_v34, %v318_v33 }
  0xea   : > { %v299_v37 = vcombine.high %v293_v35, %v293_v35  ;;  %v321_v38 = vsel %vm320_vm11, %v314_v31, %v319_v36  ;;  %v346_v39 = vpop.permute.xlu1 %345  ;;  %v344_v40 = vpop.permute.xlu0 %343  ;;  %v301_v44 = vsel %vm199_vm12, %v293_v35, 0.0  ;;  %vm527_vm11 = vcmask 1039360  }
  0xeb   : > { %v323_v41 = vmul.f32 %v321_v38, %v1256_v27  ;;  %v348_v42 = vrot.slane %v346_v39, 4  ;;  %v347_v43 = vrot.slane %v344_v40, 4 }
  0xec   : > { %v302_v45 = vsel %vm200_vm13, %v299_v37, 0.0 }
  0xed   : > { %v305_v46 = vcombine.low %v301_v44, %v302_v45  ;;  %v329_v47 = vcombine.high %v323_v41, %v323_v41  ;;  %v349_v48 = vsel %vm139_vm2, %v347_v43, %v348_v42  ;;  %v331_v49 = vsel %vm201_vm14, %v323_v41, 0.0 }
  0xee   : > { %v351_v50 = vsel %vm350_vm15, %v344_v40, %v349_v48  ;;  %v372_v54 = vpop.permute.xlu1 %371  ;;  %v370_v55 = vpop.permute.xlu0 %369  ;;  %vm553_vm15 = vcmask 1031168  }
  0xef   : > { %907 = vst [vmem:[%s1289_s30 + $0x18] sm:$0xff] %v305_v46  ;;  %v332_v56 = vsel %vm202_vm0, %v329_v47, 0.0  ;;  %v353_v57 = vmul.f32 %v351_v50, %v1256_v27  ;;  %v374_v58 = vrot.slane %v372_v54, 4  ;;  %v373_v59 = vrot.slane %v370_v55, 4 }
  0xf0   : > { %v335_v61 = vcombine.low %v331_v49, %v332_v56  ;;  %v525_v46 = vrot.slane %v1294_v51, 4  ;;  %v551_v51 = vrot.slane %v1296_v52, 4  ;;  %v577_v52 = vrot.slane %v1298_v53, 4 }
  0xf1   : > { %v355_v62 = vcombine.high %v353_v57, %v353_v57  ;;  %v375_v63 = vsel %vm139_vm2, %v373_v59, %v374_v58  ;;  %v357_v0 = vsel %vm195_vm6, %v353_v57, 0.0 }
  0xf2   : > { %908 = vst [vmem:[%s1289_s30 + $0x20] sm:$0xff] %v335_v61  ;;  %v377_v1 = vsel %vm376_vm1, %v370_v55, %v375_v63  ;;  %v415_v3 = vpop.permute.xlu1 %414  ;;  %v413_v4 = vpop.permute.xlu0 %412  ;;  %vm579_vm1 = vcmask 932864  }
  0xf3   : > { %v358_v5 = vsel %vm196_vm8, %v355_v62, 0.0  ;;  %v379_v6 = vmul.f32 %v377_v1, %v1256_v27  ;;  %v417_v7 = vrot.slane %v415_v3, 4  ;;  %v416_v8 = vrot.slane %v413_v4, 4 }
  0xf4   : > { %v361_v9 = vcombine.low %v357_v0, %v358_v5 }
  0xf5   : > { %v381_v10 = vcombine.high %v379_v6, %v379_v6  ;;  %v418_v11 = vsel %vm139_vm2, %v416_v8, %v417_v7  ;;  %v383_v12 = vsel %vm197_vm5, %v379_v6, 0.0 }
  0xf6   : > { %909 = vst [vmem:[%s1289_s30 + $0x28] sm:$0xff] %v361_v9  ;;  %v420_v13 = vsel %vm419_vm3, %v413_v4, %v418_v11  ;;  %v441_v14 = vpop.permute.xlu1 %440  ;;  %v439_v15 = vpop.permute.xlu0 %438  ;;  %vm605_vm3 = vcmask 924672  }
  0xf7   : > { %v384_v16 = vsel %vm198_vm7, %v381_v10, 0.0  ;;  %v422_v17 = vmul.f32 %v420_v13, %v1256_v27  ;;  %v443_v18 = vrot.slane %v441_v14, 4  ;;  %v442_v19 = vrot.slane %v439_v15, 4 }
  0xf8   : > { %v387_v20 = vcombine.low %v383_v12, %v384_v16 }
  0xf9   : > { %v424_v21 = vcombine.high %v422_v17, %v422_v17  ;;  %v444_v22 = vsel %vm139_vm2, %v442_v19, %v443_v18  ;;  %v426_v23 = vsel %vm199_vm12, %v422_v17, 0.0 }
  0xfa   : > { %910 = vst [vmem:[%s1289_s30 + $0x30] sm:$0xff] %v387_v20  ;;  %v446_v24 = vsel %vm445_vm4, %v439_v15, %v444_v22  ;;  %v467_v25 = vpop.permute.xlu1 %466  ;;  %v465_v26 = vpop.permute.xlu0 %464  ;;  %vm648_vm4 = vcmask 908288  }
  0xfb   : > { %v427_v28 = vsel %vm200_vm13, %v424_v21, 0.0  ;;  %v448_v29 = vmul.f32 %v446_v24, %v1256_v27  ;;  %v469_v30 = vrot.slane %v467_v25, 4  ;;  %v468_v31 = vrot.slane %v465_v26, 4 }
  0xfc   : > { %v430_v32 = vcombine.low %v426_v23, %v427_v28 }
  0xfd   : > { %v450_v33 = vcombine.high %v448_v29, %v448_v29  ;;  %v470_v34 = vsel %vm139_vm2, %v468_v31, %v469_v30  ;;  %v452_v35 = vsel %vm201_vm14, %v448_v29, 0.0 }
  0xfe   : > { %912 = vst [vmem:[%s1289_s30 + $0x40] sm:$0xff] %v430_v32  ;;  %v472_v36 = vsel %vm471_vm9, %v465_v26, %v470_v34  ;;  %v493_v37 = vpop.permute.xlu1 %492  ;;  %v491_v38 = vpop.permute.xlu0 %490  ;;  %vm674_vm9 = vcmask 900096  }
  0xff   : > { %v453_v39 = vsel %vm202_vm0, %v450_v33, 0.0  ;;  %v474_v40 = vmul.f32 %v472_v36, %v1256_v27  ;;  %v495_v41 = vrot.slane %v493_v37, 4  ;;  %v494_v42 = vrot.slane %v491_v38, 4 }
 0x100   : > { %v456_v43 = vcombine.low %v452_v35, %v453_v39 }
 0x101   : > { %v476_v44 = vcombine.high %v474_v40, %v474_v40  ;;  %v496_v45 = vsel %vm139_vm2, %v494_v42, %v495_v41  ;;  %v478_v50 = vsel %vm195_vm6, %v474_v40, 0.0 }
 0x102   : > { %913 = vst [vmem:[%s1289_s30 + $0x48] sm:$0xff] %v456_v43  ;;  %v498_v47 = vsel %vm497_vm10, %v491_v38, %v496_v45  ;;  %v521_v48 = vpop.permute.xlu0 %520  ;;  %v601_v49 = vpop.permute.xlu1 %600  ;;  %vm700_vm10 = vcmask 801792  }
 0x103   : > { %v479_v54 = vsel %vm196_vm8, %v476_v44, 0.0  ;;  %v500_v55 = vmul.f32 %v498_v47, %v1256_v27  ;;  %v524_v56 = vrot.slane %v521_v48, 4  ;;  %v603_v53 = vrot.slane %v601_v49, 4 }
 0x104   : > { %v482_v57 = vcombine.low %v478_v50, %v479_v54 }
 0x105   : > { %v502_v58 = vcombine.high %v500_v55, %v500_v55  ;;  %v526_v59 = vsel %vm139_vm2, %v524_v56, %v525_v46  ;;  %v504_v0 = vsel %vm197_vm5, %v500_v55, 0.0 }
 0x106   : > { %914 = vst [vmem:[%s1289_s30 + $0x50] sm:$0xff] %v482_v57  ;;  %v528_v61 = vsel %vm527_vm11, %v521_v48, %v526_v59  ;;  %v547_v62 = vpop.permute.xlu0 %546  ;;  %v644_v63 = vpop.permute.xlu1 %643  ;;  %vm726_vm11 = vcmask 793600  }
 0x107   : > { %v505_v1 = vsel %vm198_vm7, %v502_v58, 0.0  ;;  %v530_v3 = vmul.f32 %v528_v61, %v1256_v27  ;;  %v550_v4 = vrot.slane %v547_v62, 4  ;;  %v646_v29 = vrot.slane %v644_v63, 4 }
 0x108   : > { %v508_v5 = vcombine.low %v504_v0, %v505_v1 }
 0x109   : > { %v532_v6 = vcombine.high %v530_v3, %v530_v3  ;;  %v552_v7 = vsel %vm139_vm2, %v550_v4, %v551_v51  ;;  %v534_v11 = vsel %vm199_vm12, %v530_v3, 0.0 }
 0x10a   : > { %915 = vst [vmem:[%s1289_s30 + $0x58] sm:$0xff] %v508_v5  ;;  %v554_v8 = vsel %vm553_vm15, %v547_v62, %v552_v7  ;;  %v573_v9 = vpop.permute.xlu0 %572  ;;  %v670_v10 = vpop.permute.xlu1 %669  ;;  %vm769_vm15 = vcmask 777216  }
 0x10b   : > { %v535_v12 = vsel %vm200_vm13, %v532_v6, 0.0  ;;  %v556_v13 = vmul.f32 %v554_v8, %v1256_v27  ;;  %v576_v14 = vrot.slane %v573_v9, 4  ;;  %v672_v40 = vrot.slane %v670_v10, 4 }
 0x10c   : > { %v538_v15 = vcombine.low %v534_v11, %v535_v12 }
 0x10d   : > { %v558_v16 = vcombine.high %v556_v13, %v556_v13  ;;  %v578_v17 = vsel %vm139_vm2, %v576_v14, %v577_v52  ;;  %v560_v21 = vsel %vm201_vm14, %v556_v13, 0.0 }
 0x10e   : > { %917 = vst [vmem:[%s1289_s30 + $0x68] sm:$0xff] %v538_v15  ;;  %v580_v18 = vsel %vm579_vm1, %v573_v9, %v578_v17  ;;  %v599_v19 = vpop.permute.xlu0 %598  ;;  %v696_v20 = vpop.permute.xlu1 %695  ;;  %vm795_vm1 = vcmask 769024  }
 0x10f   : > { %v561_v22 = vsel %vm202_vm0, %v558_v16, 0.0  ;;  %v582_v23 = vmul.f32 %v580_v18, %v1256_v27  ;;  %v602_v24 = vrot.slane %v599_v19, 4  ;;  %v698_v54 = vrot.slane %v696_v20, 4 }
 0x110   : > { %v564_v25 = vcombine.low %v560_v21, %v561_v22 }
 0x111   : > { %v584_v26 = vcombine.high %v582_v23, %v582_v23  ;;  %v604_v28 = vsel %vm139_vm2, %v602_v24, %v603_v53  ;;  %v586_v33 = vsel %vm195_vm6, %v582_v23, 0.0 }
 0x112   : > { %918 = vst [vmem:[%s1289_s30 + $0x70] sm:$0xff] %v564_v25  ;;  %v606_v30 = vsel %vm605_vm3, %v599_v19, %v604_v28  ;;  %v642_v31 = vpop.permute.xlu0 %641  ;;  %v722_v32 = vpop.permute.xlu1 %721 }
 0x113   : > { %v587_v34 = vsel %vm196_vm8, %v584_v26, 0.0  ;;  %v608_v35 = vmul.f32 %v606_v30, %v1256_v27  ;;  %v645_v36 = vrot.slane %v642_v31, 4  ;;  %v724_v1 = vrot.slane %v722_v32, 4 }
 0x114   : > { %v590_v37 = vcombine.low %v586_v33, %v587_v34 }
 0x115   : > { %v610_v38 = vcombine.high %v608_v35, %v608_v35  ;;  %v647_v39 = vsel %vm139_vm2, %v645_v36, %v646_v29  ;;  %v612_v44 = vsel %vm197_vm5, %v608_v35, 0.0 }
 0x116   : > { %919 = vst [vmem:[%s1289_s30 + $0x78] sm:$0xff] %v590_v37  ;;  %v649_v41 = vsel %vm648_vm4, %v642_v31, %v647_v39  ;;  %v668_v42 = vpop.permute.xlu0 %667  ;;  %v765_v43 = vpop.permute.xlu1 %764 }
 0x117   : > { %v613_v45 = vsel %vm198_vm7, %v610_v38, 0.0  ;;  %v651_v46 = vmul.f32 %v649_v41, %v1256_v27  ;;  %v671_v47 = vrot.slane %v668_v42, 4  ;;  %v767_v11 = vrot.slane %v765_v43, 4 }
 0x118   : > { %v616_v48 = vcombine.low %v612_v44, %v613_v45 }
 0x119   : > { %v653_v49 = vcombine.high %v651_v46, %v651_v46  ;;  %v673_v50 = vsel %vm139_vm2, %v671_v47, %v672_v40  ;;  %v655_v57 = vsel %vm199_vm12, %v651_v46, 0.0 }
 0x11a   : > { %920 = vst [vmem:[%s1289_s30 + $0x80] sm:$0xff] %v616_v48  ;;  %v675_v55 = vsel %vm674_vm9, %v668_v42, %v673_v50  ;;  %v694_v56 = vpop.permute.xlu0 %693  ;;  %v791_v62 = vpop.permute.xlu1 %790 }
 0x11b   : > { %v656_v58 = vsel %vm200_vm13, %v653_v49, 0.0  ;;  %v677_v59 = vmul.f32 %v675_v55, %v1256_v27  ;;  %v697_v51 = vrot.slane %v694_v56, 4  ;;  %v793_v21 = vrot.slane %v791_v62, 4 }
 0x11c   : > { %v659_v61 = vcombine.low %v655_v57, %v656_v58 }
 0x11d   : > { %v679_v63 = vcombine.high %v677_v59, %v677_v59  ;;  %v699_v0 = vsel %vm139_vm2, %v697_v51, %v698_v54  ;;  %v681_v5 = vsel %vm201_vm14, %v677_v59, 0.0 }
 0x11e   : > { %922 = vst [vmem:[%s1289_s30 + $0x90] sm:$0xff] %v659_v61  ;;  %v701_v3 = vsel %vm700_vm10, %v694_v56, %v699_v0  ;;  %v720_v4 = vpop.permute.xlu0 %719  ;;  %v398_v14 = vpop.permute.xlu1 %397 }
 0x11f   : > { %v682_v6 = vsel %vm202_vm0, %v679_v63, 0.0  ;;  %v703_v7 = vmul.f32 %v701_v3, %v1256_v27  ;;  %v723_v52 = vrot.slane %v720_v4, 4  ;;  %v400_v33 = vrot.slane %v398_v14, 4 }
 0x120   : > { %v685_v8 = vcombine.low %v681_v5, %v682_v6 }
 0x121   : > { %v705_v9 = vcombine.high %v703_v7, %v703_v7  ;;  %v725_v10 = vsel %vm139_vm2, %v723_v52, %v724_v1  ;;  %v707_v15 = vsel %vm195_vm6, %v703_v7, 0.0  ;;  %vm402_vm6 = vcmask 130048  }
 0x122   : > { %923 = vst [vmem:[%s1289_s30 + $0x98] sm:$0xff] %v685_v8  ;;  %v727_v12 = vsel %vm726_vm11, %v720_v4, %v725_v10  ;;  %v763_v13 = vpop.permute.xlu0 %762  ;;  %v627_v30 = vpop.permute.xlu1 %626 }
 0x123   : > { %v708_v16 = vsel %vm196_vm8, %v705_v9, 0.0  ;;  %v729_v17 = vmul.f32 %v727_v12, %v1256_v27  ;;  %v766_v53 = vrot.slane %v763_v13, 4  ;;  %v629_v43 = vrot.slane %v627_v30, 4 }
 0x124   : > { %v711_v18 = vcombine.low %v707_v15, %v708_v16 }
 0x125   : > { %v731_v19 = vcombine.high %v729_v17, %v729_v17  ;;  %v768_v20 = vsel %vm139_vm2, %v766_v53, %v767_v11  ;;  %v733_v24 = vsel %vm197_vm5, %v729_v17, 0.0  ;;  %vm631_vm5 = vcmask 916480  }
 0x126   : > { %924 = vst [vmem:[%s1289_s30 + $0xa0] sm:$0xff] %v711_v18  ;;  %v770_v22 = vsel %vm769_vm15, %v763_v13, %v768_v20  ;;  %v789_v23 = vpop.permute.xlu0 %788  ;;  %v748_v46 = vpop.permute.xlu1 %747 }
 0x127   : > { %v734_v25 = vsel %vm198_vm7, %v731_v19, 0.0  ;;  %v772_v26 = vmul.f32 %v770_v22, %v1256_v27  ;;  %v792_v28 = vrot.slane %v789_v23, 4  ;;  %v750_v56 = vrot.slane %v748_v46, 4 }
 0x128   : > { %v737_v29 = vcombine.low %v733_v24, %v734_v25  ;;  %vm752_vm7 = vcmask 785408  }
 0x129   : > { %v774_v31 = vcombine.high %v772_v26, %v772_v26  ;;  %v794_v32 = vsel %vm139_vm2, %v792_v28, %v793_v21  ;;  %v776_v36 = vsel %vm199_vm12, %v772_v26, 0.0 }
 0x12a   : > { %925 = vst [vmem:[%s1289_s30 + $0xa8] sm:$0xff] %v737_v29  ;;  %v796_v34 = vsel %vm795_vm1, %v789_v23, %v794_v32  ;;  %v396_v35 = vpop.permute.xlu0 %395 }
 0x12b   : > { %v777_v37 = vsel %vm200_vm13, %v774_v31, 0.0  ;;  %v798_v38 = vmul.f32 %v796_v34, %v1256_v27  ;;  %v399_v39 = vrot.slane %v396_v35, 4 }
 0x12c   : > { %v780_v40 = vcombine.low %v776_v36, %v777_v37 }
 0x12d   : > { %v800_v41 = vcombine.high %v798_v38, %v798_v38  ;;  %v401_v42 = vsel %vm139_vm2, %v399_v39, %v400_v33  ;;  %v802_v47 = vsel %vm201_vm14, %v798_v38, 0.0 }
 0x12e   : > { %927 = vst [vmem:[%s1289_s30 + $0xb8] sm:$0xff] %v780_v40  ;;  %v403_v44 = vsel %vm402_vm6, %v396_v35, %v401_v42  ;;  %v625_v45 = vpop.permute.xlu0 %624 }
 0x12f   : > { %v803_v48 = vsel %vm202_vm0, %v800_v41, 0.0  ;;  %v405_v49 = vmul.f32 %v403_v44, %v1256_v27  ;;  %v628_v50 = vrot.slane %v625_v45, 4 }
 0x130   : > { %v806_v54 = vcombine.low %v802_v47, %v803_v48 }
 0x131   : > { %911 = vst [vmem:[%s1289_s30 + $0x38] sm:$0xff] %v405_v49  ;;  %v630_v55 = vsel %vm139_vm2, %v628_v50, %v629_v43 }
 0x132   : > { %928 = vst [vmem:[%s1289_s30 + $0xc0] sm:$0xff] %v806_v54  ;;  %v632_v57 = vsel %vm631_vm5, %v625_v45, %v630_v55  ;;  %v746_v58 = vpop.permute.xlu0 %745 }
 0x133   : > { %v634_v60 = vmul.f32 %v632_v57, %v1256_v27  ;;  %v749_v2 = vrot.slane %v746_v58, 4 }
 0x135   : > { %921 = vst [vmem:[%s1289_s30 + $0x88] sm:$0xff] %v634_v60  ;;  %v751_v59 = vsel %vm139_vm2, %v749_v2, %v750_v56 }
 0x136   : > { %v753_v51 = vsel %vm752_vm7, %v746_v58, %v751_v59 }
 0x137   : > { %v755_v61 = vmul.f32 %v753_v51, %v1256_v27 }
 0x139   : > { %926 = vst [vmem:[%s1289_s30 + $0xb0] sm:$0xff] %v755_v61 }
 0x13a   : > { %1053 = shalt.err (!%p1050_p10)
}
 0x13b   : > { %s1054_s22 = scalar_lea.hbm %s1471_s11, 3200  ;;  %s1058_s25 = scalar_lea.hbm %s1519_s1, 6400 }
 0x13c   : > { %p1055_p2 = scmp.ne.s32.totalorder %s1471_s11, %s1054_s22  ;;  %p1059_p7 = scmp.lt.s32.totalorder %s1471_s11, %s1519_s1 }
 0x13d   : > { %p1060_p0 = scmp.lt.s32.totalorder %s1058_s25, %s1054_s22 }
 0x13e   : > { %p1056_p4 = pnand %p1055_p2, %p1530_p12 }
 0x13f   : > { %p1061_p6 = por %p1060_p0, %p1059_p7 }
 0x140   : > { %p1057_p9 = pneg %p1056_p4 }
 0x142   : > { %p1062_p11 = pnand %p1061_p6, %p1057_p9 }
 0x144   : > { %1065 = shalt.err (!%p1062_p11)
}
 0x145   : > { %s1133_s27 = smov 128   ;;  %s1134_s28 = smov 8  }
 0x146   : > { %937 = dma.vmem_to_hbm [thread:$0]  (%p1530_p12), %s1473_s3, 3200, %s1471_s11, %s811_s10, %s1133_s27, %s1133_s27, %s1134_s28  }
 0x147 PF: > { %s839_s29 = sand.u32 1, %s1092_s6   ;;  %p1531_p13 = scmp.ne.s32.totalorder %s1525_s19, 0 }
 0x148   : > { %p1532_p1 = scmp.ge.s32.totalorder %s1104_s9, 2  ;;  %s840_s30 = scalar_lea.sflag [#allocation5], %s839_s29 }
 0x14a   : > { %p944_p3 = pnand %p1532_p1, %p1531_p13 }
 0x14c   : > { %p945_p5 = pneg %p944_p3 }
 0x14e   : > { %1087 = dma.done.wait (%p945_p5), %s840_s30, 3200  }
 0x14f   : > { %1089 = vsyncadd (%p945_p5), %s840_s30, 4294964096  ;;  %p14_p8 = scmp.ge.s32.totalorder %s1170_s12, 4   ;;  %s1533_s6 = smov %s1096_s7 }
 0x150   : > { %s1534_s7 = smov %s1100_s8  ;;  %s1535_s8 = smov %s1182_s15 }
 0x151   : > { %s1536_s9 = smov %s1170_s12  ;;  %16 = sbr.rel (!%p14_p8) target bundleno = 5 (0x5), region = 93 }
 0x156   :  { %845 = vsyncpa [#allocation4], 1 }
 0x157   :  { %847 = vsyncpa [#allocation4 + $0x1], 1 }
 0x158   :  { %848 = vsyncpa [#allocation5], 1 }
 0x159   :  { %850 = vsyncpa [#allocation5 + $0x1], 1 }

</bundles_post_ra>
